<compile_context>
chip_gen: v5e
topology: v5e:2x2
jax: 0.10.0
libtpu: 0.0.40
codegen_flags: <defaults>
</compile_context>

<pallas_src>
import functools

import jax
import jax.numpy as jnp
from jax.experimental import pallas as pl
from jax.experimental.pallas import tpu as pltpu


def _round_up(x, m):
    return ((x + m - 1) // m) * m


def _pick_tile(dim, cap):
    """Largest multiple of 128 that divides `dim` (itself a multiple of 128)
    and is <= cap (falls back to 128)."""
    t = max(128, (min(dim, cap) // 128) * 128)
    while dim % t:
        t -= 128
    return t


# --------------------------- dense matmul kernel ------------------------------

def _matmul_kernel(*refs, relu, has_bias):
    if has_bias:
        x_ref, w_ref, b_ref, o_ref, acc_ref = refs
    else:
        x_ref, w_ref, o_ref, acc_ref = refs

    @pl.when(pl.program_id(2) == 0)
    def _():
        acc_ref[...] = jnp.zeros_like(acc_ref)

    acc_ref[...] += jnp.dot(
        x_ref[...], w_ref[...], preferred_element_type=jnp.float32
    )

    @pl.when(pl.program_id(2) == pl.num_programs(2) - 1)
    def _():
        r = acc_ref[...]
        if has_bias:
            r = r + b_ref[...]          # bias add in f32
        if relu:
            r = jnp.maximum(r, 0.0)
        o_ref[...] = r.astype(o_ref.dtype)


def matmul_padded(x, w, b=None, *, relu=False, out_dtype=jnp.bfloat16,
                  tm=128, tk_cap=512, tn_cap=512):
    """(x @ w [+ b]) with optional fused ReLU on PRE-PADDED operands.

    x: [M, K] bf16, w: [K, N] bf16 (M, K, N multiples of 128, tm | M),
    b: [1, N] f32 or None.  f32 accumulation; output dtype `out_dtype`.
    """
    M, K = x.shape
    Kw, N = w.shape
    assert K == Kw and M % tm == 0 and K % 128 == 0 and N % 128 == 0
    tk = _pick_tile(K, tk_cap)
    tn = _pick_tile(N, tn_cap)

    has_bias = b is not None
    in_specs = [
        pl.BlockSpec((tm, tk), lambda i, j, k: (i, k)),
        pl.BlockSpec((tk, tn), lambda i, j, k: (k, j)),
    ]
    args = [x, w]
    if has_bias:
        in_specs.append(pl.BlockSpec((1, tn), lambda i, j, k: (0, j)))
        args.append(b)

    return pl.pallas_call(
        functools.partial(_matmul_kernel, relu=relu, has_bias=has_bias),
        out_shape=jax.ShapeDtypeStruct((M, N), out_dtype),
        grid=(M // tm, N // tn, K // tk),
        in_specs=in_specs,
        out_specs=pl.BlockSpec((tm, tn), lambda i, j, k: (i, j)),
        scratch_shapes=[pltpu.VMEM((tm, tn), jnp.float32)],
        compiler_params=pltpu.CompilerParams(
            dimension_semantics=("parallel", "parallel", "arbitrary")
        ),
    )(*args)


# ----------------- fused per-graph GraphConv (all graphs, one call) -----------

def _gconv_kernel(a_ref, t_ref, o_ref, acc_ref):
    @pl.when(pl.program_id(2) == 0)
    def _():
        acc_ref[...] = jnp.zeros_like(acc_ref)

    acc_ref[...] += jnp.dot(
        a_ref[...], t_ref[...], preferred_element_type=jnp.float32
    )

    @pl.when(pl.program_id(2) == pl.num_programs(2) - 1)
    def _():
        o_ref[...] = jnp.maximum(acc_ref[...], 0.0).astype(o_ref.dtype)


def graph_conv_all(a_hats, t, *, tm):
    """out[:, g*Hp:(g+1)*Hp] = relu(a_hats[g] @ t) for every graph g,
    written directly into the concatenated slab (the torch.cat is free).

    a_hats: [G, Np, Np] bf16, t: [Np, Hp] bf16, tm | Np, 128 | Hp.
    """
    G, Np, _ = a_hats.shape
    Hp = t.shape[1]
    tk = tm  # square node tiles over A
    return pl.pallas_call(
        _gconv_kernel,
        out_shape=jax.ShapeDtypeStruct((Np, G * Hp), jnp.bfloat16),
        grid=(G, Np // tm, Np // tk),
        in_specs=[
            pl.BlockSpec((None, tm, tk), lambda g, i, k: (g, i, k)),
            pl.BlockSpec((tk, Hp), lambda g, i, k: (k, 0)),
        ],
        out_specs=pl.BlockSpec((tm, Hp), lambda g, i, k: (i, g)),
        scratch_shapes=[pltpu.VMEM((tm, Hp), jnp.float32)],
        compiler_params=pltpu.CompilerParams(
            dimension_semantics=("parallel", "parallel", "arbitrary")
        ),
    )(a_hats, t)


# ------------------------------- forward pass ---------------------------------

def gwnn2_forward(in_feat, a_hats, params):
    """Pallas forward matching GWNN2.forward (eval mode).

    in_feat: [N, in_feats]; a_hats: [G, N, N] normalized dense adjacencies.
    """
    # TODO(synk): Dropout(0.5) applies only in training mode; identity here.
    N, in_feats = in_feat.shape
    G = a_hats.shape[0]
    h = params["conv1_w"].shape[1]
    hg = G * h
    ncls = params["l3_w"].shape[1]

    # -- padded sizes (everything padded ONCE, kept padded between layers) -----
    Np0 = _round_up(N, 128)
    nt = -(-Np0 // 1024)                        # node tiles, cap 1024
    tm = _round_up(-(-Np0 // nt), 128)          # bounded padding (<= ~128 rows)
    Np = nt * tm
    Fp = _round_up(in_feats, 128)
    Hp = _round_up(h, 128)
    HGp = _round_up(hg, 128)
    Cp = _round_up(ncls, 128)

    bf = jnp.bfloat16
    x = jnp.pad(in_feat.astype(jnp.float32),
                ((0, Np - N), (0, Fp - in_feats))).astype(bf)
    a = jnp.pad(a_hats.astype(jnp.float32),
                ((0, 0), (0, Np - N), (0, Np - N))).astype(bf)

    def pad2(w, rp, cp):                        # contiguous pad
        return jnp.pad(w, ((0, rp - w.shape[0]), (0, cp - w.shape[1]))).astype(bf)

    def pad_blocked_rows(w, cp):
        # rows laid out as G blocks of h -> G blocks of Hp, matching the
        # concatenated (padded) activation layout produced by graph_conv_all.
        w3 = w.reshape(G, h, w.shape[1])
        w3 = jnp.pad(w3, ((0, 0), (0, Hp - h), (0, cp - w.shape[1])))
        return w3.reshape(G * Hp, cp).astype(bf)

    def pad_bias(b, cp):
        return jnp.pad(b.astype(jnp.float32), (0, cp - b.shape[0]))[None, :]

    conv1_w = pad2(params["conv1_w"], Fp, Hp)
    l1_w = pad_blocked_rows(params["l1_w"], HGp)
    l1_b = pad_bias(params["l1_b"], HGp)
    l2_w = pad2(params["l2_w"], HGp, HGp)
    l2_b = pad_bias(params["l2_b"], HGp)
    conv2_w = pad2(params["conv2_w"], HGp, Hp)
    l3_w = pad_blocked_rows(params["l3_w"], Cp)
    l3_b = pad_bias(params["l3_b"], Cp)

    # -- layer chain: 7 pallas_calls total, bf16 intermediates, f32 final ------
    t1 = matmul_padded(x, conv1_w, tm=tm)                         # [Np, Hp]
    hcat = graph_conv_all(a, t1, tm=tm)                           # [Np, G*Hp]
    hh = matmul_padded(hcat, l1_w, l1_b, relu=True, tm=tm)        # [Np, HGp]
    hh = matmul_padded(hh, l2_w, l2_b, relu=True, tm=tm)          # [Np, HGp]
    t2 = matmul_padded(hh, conv2_w, tm=tm)                        # [Np, Hp]
    hcat = graph_conv_all(a, t2, tm=tm)                           # [Np, G*Hp]
    out = matmul_padded(hcat, l3_w, l3_b, relu=False,
                        out_dtype=jnp.float32, tm=tm)             # [Np, Cp]
    return out[:N, :ncls]


# ----------------------- pure-JAX reference (same bf16 rounding points) -------

def _ref_mm(a, b, bias=None, relu=False):
    r = jnp.dot(a.astype(jnp.bfloat16), b.astype(jnp.bfloat16),
                preferred_element_type=jnp.float32)
    if bias is not None:
        r = r + bias
    if relu:
        r = jnp.maximum(r, 0.0)
    return r


def gwnn2_reference(in_feat, a_hats, params):
    x = in_feat.astype(jnp.float32)
    G = a_hats.shape[0]
    t1 = _ref_mm(x, params["conv1_w"])
    h = jnp.concatenate([_ref_mm(a_hats[g], t1, relu=True) for g in range(G)], -1)
    h = _ref_mm(h, params["l1_w"], params["l1_b"], relu=True)
    h = _ref_mm(h, params["l2_w"], params["l2_b"], relu=True)
    t2 = _ref_mm(h, params["conv2_w"])
    h = jnp.concatenate([_ref_mm(a_hats[g], t2, relu=True) for g in range(G)], -1)
    return _ref_mm(h, params["l3_w"], params["l3_b"], relu=False)


# ----------------------------- graph / parameter construction -----------------

def normalize_adjacency(adj_w):
    """DGL GraphConv(norm='both') with edge_weight: unweighted degrees, clamp>=1.
    adj_w[v, u] = weight of edge u -> v (0 means no edge)."""
    mask = (adj_w != 0).astype(jnp.float32)
    in_deg = jnp.maximum(mask.sum(axis=1), 1.0)    # incoming edges per dst v
    out_deg = jnp.maximum(mask.sum(axis=0), 1.0)   # outgoing edges per src u
    return adj_w * (in_deg[:, None] ** -0.5) * (out_deg[None, :] ** -0.5)


def init_linear(key, fan_in, fan_out):
    """torch.nn.Linear default init, weight stored as [in, out]."""
    kw, kb = jax.random.split(key)
    bound = 1.0 / jnp.sqrt(jnp.float32(fan_in))
    w = jax.random.uniform(kw, (fan_in, fan_out), jnp.float32, -bound, bound)
    b = jax.random.uniform(kb, (fan_out,), jnp.float32, -bound, bound)
    return w, b


def init_graphconv(key, fan_in, fan_out):
    """DGL GraphConv default: xavier_uniform weight, no bias."""
    bound = jnp.sqrt(6.0 / (fan_in + fan_out))
    return jax.random.uniform(key, (fan_in, fan_out), jnp.float32, -bound, bound)


if __name__ == "__main__":
    num_nodes, in_feats, h_feats, num_classes, gnums = 64, 32, 16, 8, 2

    key = jax.random.PRNGKey(0)
    keys = jax.random.split(key, 8)

    in_feat = jax.random.normal(keys[0], (num_nodes, in_feats), jnp.float32)

    # two random weighted graphs (dense adjacency, ~20% density, self-loops)
    a_hats = []
    for g in range(gnums):
        km, kw = jax.random.split(keys[1 + g])
        mask = (jax.random.uniform(km, (num_nodes, num_nodes)) < 0.2).astype(jnp.float32)
        mask = jnp.maximum(mask, jnp.eye(num_nodes, dtype=jnp.float32))
        w = jax.random.uniform(kw, (num_nodes, num_nodes), jnp.float32, 0.1, 1.0)
        a_hats.append(normalize_adjacency(mask * w))
    a_hats = jnp.stack(a_hats)                                      # [gnums, N, N]

    hg = h_feats * gnums
    conv1_w = init_graphconv(keys[3], in_feats, h_feats)
    conv2_w = init_graphconv(keys[4], hg, h_feats)
    l1_w, l1_b = init_linear(keys[5], hg, hg)
    l2_w, l2_b = init_linear(keys[6], hg, hg)
    l3_w, l3_b = init_linear(keys[7], hg, num_classes)
    params = dict(conv1_w=conv1_w, conv2_w=conv2_w,
                  l1_w=l1_w, l1_b=l1_b, l2_w=l2_w, l2_b=l2_b,
                  l3_w=l3_w, l3_b=l3_b)

    fwd = jax.jit(gwnn2_forward)
    out = jax.block_until_ready(fwd(in_feat, a_hats, params))
    assert out.shape == (num_nodes, num_classes)

    ref = gwnn2_reference(in_feat, a_hats, params)
    max_err = float(jnp.max(jnp.abs(out - ref)))
    assert jnp.allclose(out, ref, atol=5e-3, rtol=5e-3), f"max abs err {max_err}"

    print("KERNEL_OK")
</pallas_src>

<mosaic_0001>
module attributes {stable_mosaic.version = 11 : i64} {
  func.func @_matmul_kernel(%arg0: i32, %arg1: i32, %arg2: i32, %arg3: memref<128x128xbf16, #tpu.memory_space<vmem>>, %arg4: memref<128x128xbf16, #tpu.memory_space<vmem>>, %arg5: memref<128x128xbf16, #tpu.memory_space<vmem>>, %arg6: memref<128x128xf32, #tpu.memory_space<vmem>>) attributes {dimension_semantics = [#tpu.dimension_semantics<parallel>, #tpu.dimension_semantics<parallel>, #tpu.dimension_semantics<arbitrary>], iteration_bounds = array<i64: 1, 1, 1>, scalar_prefetch = 0 : i64, scratch_operands = 1 : i64, tpu.core_type = #tpu.core_type<tc>, window_params = [{transform_indices = @transform_0, window_bounds = array<i64: 128, 128>}, {transform_indices = @transform_1, window_bounds = array<i64: 128, 128>}, {transform_indices = @transform_2, window_bounds = array<i64: 128, 128>}]} {
    %c0_i32 = arith.constant 0 : i32
    %0 = arith.cmpi eq, %arg2, %c0_i32 : i32
    %1 = arith.extui %0 : i1 to i32
    %c0_i32_0 = arith.constant 0 : i32
    %2 = arith.cmpi ne, %1, %c0_i32_0 : i32
    scf.if %2 {
      %cst_10 = arith.constant 0.000000e+00 : f32
      %12 = vector.broadcast %cst_10 : f32 to vector<128x128xf32>
      %c0_11 = arith.constant 0 : index
      %c0_12 = arith.constant 0 : index
      %13 = vector.load %arg6[%c0_11, %c0_12] : memref<128x128xf32, #tpu.memory_space<vmem>>, vector<128x128xf32>
      tpu.vector_store %arg6[%c0_11, %c0_12], %12 {strides = array<i32>} : memref<128x128xf32, #tpu.memory_space<vmem>>, vector<128x128xf32>,
    } else {
    }
    %c0 = arith.constant 0 : index
    %c0_1 = arith.constant 0 : index
    %3 = vector.load %arg6[%c0, %c0_1] : memref<128x128xf32, #tpu.memory_space<vmem>>, vector<128x128xf32>
    %c0_2 = arith.constant 0 : index
    %c0_3 = arith.constant 0 : index
    %4 = vector.load %arg3[%c0_2, %c0_3] : memref<128x128xbf16, #tpu.memory_space<vmem>>, vector<128x128xbf16>
    %c0_4 = arith.constant 0 : index
    %c0_5 = arith.constant 0 : index
    %5 = vector.load %arg4[%c0_4, %c0_5] : memref<128x128xbf16, #tpu.memory_space<vmem>>, vector<128x128xbf16>
    %cst = arith.constant dense<0.000000e+00> : vector<128x128xf32>
    %6 = tpu.matmul %4, %5, %cst {dimension_numbers = #tpu.dot_dimension_numbers<[1], [0], [0], [1], [0, 0, 1, 1], [], []>} : vector<128x128xbf16>, vector<128x128xbf16>, vector<128x128xf32> -> vector<128x128xf32>
    %7 = arith.addf %3, %6 : vector<128x128xf32>
    %c0_6 = arith.constant 0 : index
    %c0_7 = arith.constant 0 : index
    %8 = vector.load %arg6[%c0_6, %c0_7] : memref<128x128xf32, #tpu.memory_space<vmem>>, vector<128x128xf32>
    tpu.vector_store %arg6[%c0_6, %c0_7], %7 {strides = array<i32>} : memref<128x128xf32, #tpu.memory_space<vmem>>, vector<128x128xf32>,
    %c0_i32_8 = arith.constant 0 : i32
    %9 = arith.cmpi eq, %arg2, %c0_i32_8 : i32
    %10 = arith.extui %9 : i1 to i32
    %c0_i32_9 = arith.constant 0 : i32
    %11 = arith.cmpi ne, %10, %c0_i32_9 : i32
    scf.if %11 {
      %c0_10 = arith.constant 0 : index
      %c0_11 = arith.constant 0 : index
      %12 = vector.load %arg6[%c0_10, %c0_11] : memref<128x128xf32, #tpu.memory_space<vmem>>, vector<128x128xf32>
      %13 = arith.truncf %12 : vector<128x128xf32> to vector<128x128xbf16>
      %c0_12 = arith.constant 0 : index
      %c0_13 = arith.constant 0 : index
      %14 = vector.load %arg5[%c0_12, %c0_13] : memref<128x128xbf16, #tpu.memory_space<vmem>>, vector<128x128xbf16>
      tpu.vector_store %arg5[%c0_12, %c0_13], %13 {strides = array<i32>} : memref<128x128xbf16, #tpu.memory_space<vmem>>, vector<128x128xbf16>,
    } else {
    }
    return
  }
  func.func @transform_0(%arg0: i32, %arg1: i32, %arg2: i32) -> (i32, i32) {
    %c0_i32 = arith.constant 0 : i32
    return %arg0, %arg2 : i32, i32
  }
  func.func @transform_1(%arg0: i32, %arg1: i32, %arg2: i32) -> (i32, i32) {
    %c0_i32 = arith.constant 0 : i32
    return %arg2, %arg1 : i32, i32
  }
  func.func @transform_2(%arg0: i32, %arg1: i32, %arg2: i32) -> (i32, i32) {
    %c0_i32 = arith.constant 0 : i32
    return %arg0, %arg1 : i32, i32
  }
}

module attributes {stable_mosaic.version = 11 : i64} {
  func.func @_gconv_kernel(%arg0: i32, %arg1: i32, %arg2: i32, %arg3: memref<1x128x128xbf16, #tpu.memory_space<vmem>>, %arg4: memref<128x128xbf16, #tpu.memory_space<vmem>>, %arg5: memref<128x128xbf16, #tpu.memory_space<vmem>>, %arg6: memref<128x128xf32, #tpu.memory_space<vmem>>) attributes {dimension_semantics = [#tpu.dimension_semantics<parallel>, #tpu.dimension_semantics<parallel>, #tpu.dimension_semantics<arbitrary>], iteration_bounds = array<i64: 2, 1, 1>, scalar_prefetch = 0 : i64, scratch_operands = 1 : i64, tpu.core_type = #tpu.core_type<tc>, window_params = [{transform_indices = @transform_0, window_bounds = array<i64: 1, 128, 128>}, {transform_indices = @transform_1, window_bounds = array<i64: 128, 128>}, {transform_indices = @transform_2, window_bounds = array<i64: 128, 128>}]} {
    %c0_i32 = arith.constant 0 : i32
    %0 = arith.cmpi eq, %arg2, %c0_i32 : i32
    %1 = arith.extui %0 : i1 to i32
    %c0_i32_0 = arith.constant 0 : i32
    %2 = arith.cmpi ne, %1, %c0_i32_0 : i32
    scf.if %2 {
      %cst_11 = arith.constant 0.000000e+00 : f32
      %13 = vector.broadcast %cst_11 : f32 to vector<128x128xf32>
      %c0_12 = arith.constant 0 : index
      %c0_13 = arith.constant 0 : index
      %14 = vector.load %arg6[%c0_12, %c0_13] : memref<128x128xf32, #tpu.memory_space<vmem>>, vector<128x128xf32>
      tpu.vector_store %arg6[%c0_12, %c0_13], %13 {strides = array<i32>} : memref<128x128xf32, #tpu.memory_space<vmem>>, vector<128x128xf32>,
    } else {
    }
    %c0 = arith.constant 0 : index
    %c0_1 = arith.constant 0 : index
    %3 = vector.load %arg6[%c0, %c0_1] : memref<128x128xf32, #tpu.memory_space<vmem>>, vector<128x128xf32>
    %c0_2 = arith.constant 0 : index
    %c0_3 = arith.constant 0 : index
    %c0_4 = arith.constant 0 : index
    %4 = vector.load %arg3[%c0_2, %c0_3, %c0_4] : memref<1x128x128xbf16, #tpu.memory_space<vmem>>, vector<1x128x128xbf16>
    %5 = vector.shape_cast %4 : vector<1x128x128xbf16> to vector<128x128xbf16>
    %c0_5 = arith.constant 0 : index
    %c0_6 = arith.constant 0 : index
    %6 = vector.load %arg4[%c0_5, %c0_6] : memref<128x128xbf16, #tpu.memory_space<vmem>>, vector<128x128xbf16>
    %cst = arith.constant dense<0.000000e+00> : vector<128x128xf32>
    %7 = tpu.matmul %5, %6, %cst {dimension_numbers = #tpu.dot_dimension_numbers<[1], [0], [0], [1], [0, 0, 1, 1], [], []>} : vector<128x128xbf16>, vector<128x128xbf16>, vector<128x128xf32> -> vector<128x128xf32>
    %8 = arith.addf %3, %7 : vector<128x128xf32>
    %c0_7 = arith.constant 0 : index
    %c0_8 = arith.constant 0 : index
    %9 = vector.load %arg6[%c0_7, %c0_8] : memref<128x128xf32, #tpu.memory_space<vmem>>, vector<128x128xf32>
    tpu.vector_store %arg6[%c0_7, %c0_8], %8 {strides = array<i32>} : memref<128x128xf32, #tpu.memory_space<vmem>>, vector<128x128xf32>,
    %c0_i32_9 = arith.constant 0 : i32
    %10 = arith.cmpi eq, %arg2, %c0_i32_9 : i32
    %11 = arith.extui %10 : i1 to i32
    %c0_i32_10 = arith.constant 0 : i32
    %12 = arith.cmpi ne, %11, %c0_i32_10 : i32
    scf.if %12 {
      %c0_11 = arith.constant 0 : index
      %c0_12 = arith.constant 0 : index
      %13 = vector.load %arg6[%c0_11, %c0_12] : memref<128x128xf32, #tpu.memory_space<vmem>>, vector<128x128xf32>
      %cst_13 = arith.constant 0.000000e+00 : f32
      %14 = vector.broadcast %cst_13 : f32 to vector<128x128xf32>
      %15 = arith.maximumf %13, %14 : vector<128x128xf32>
      %16 = arith.truncf %15 : vector<128x128xf32> to vector<128x128xbf16>
      %c0_14 = arith.constant 0 : index
      %c0_15 = arith.constant 0 : index
      %17 = vector.load %arg5[%c0_14, %c0_15] : memref<128x128xbf16, #tpu.memory_space<vmem>>, vector<128x128xbf16>
      tpu.vector_store %arg5[%c0_14, %c0_15], %16 {strides = array<i32>} : memref<128x128xbf16, #tpu.memory_space<vmem>>, vector<128x128xbf16>,
    } else {
    }
    return
  }
  func.func @transform_0(%arg0: i32, %arg1: i32, %arg2: i32) -> (i32, i32, i32) {
    %c0_i32 = arith.constant 0 : i32
    return %arg0, %arg1, %arg2 : i32, i32, i32
  }
  func.func @transform_1(%arg0: i32, %arg1: i32, %arg2: i32) -> (i32, i32) {
    %c0_i32 = arith.constant 0 : i32
    %c0_i32_0 = arith.constant 0 : i32
    return %arg2, %c0_i32 : i32, i32
  }
  func.func @transform_2(%arg0: i32, %arg1: i32, %arg2: i32) -> (i32, i32) {
    %c0_i32 = arith.constant 0 : i32
    return %arg1, %arg0 : i32, i32
  }
}

module attributes {stable_mosaic.version = 11 : i64} {
  func.func @_matmul_kernel(%arg0: i32, %arg1: i32, %arg2: i32, %arg3: memref<128x256xbf16, #tpu.memory_space<vmem>>, %arg4: memref<256x128xbf16, #tpu.memory_space<vmem>>, %arg5: memref<1x128xf32, #tpu.memory_space<vmem>>, %arg6: memref<128x128xbf16, #tpu.memory_space<vmem>>, %arg7: memref<128x128xf32, #tpu.memory_space<vmem>>) attributes {dimension_semantics = [#tpu.dimension_semantics<parallel>, #tpu.dimension_semantics<parallel>, #tpu.dimension_semantics<arbitrary>], iteration_bounds = array<i64: 1, 1, 1>, scalar_prefetch = 0 : i64, scratch_operands = 1 : i64, tpu.core_type = #tpu.core_type<tc>, window_params = [{transform_indices = @transform_0, window_bounds = array<i64: 128, 256>}, {transform_indices = @transform_1, window_bounds = array<i64: 256, 128>}, {transform_indices = @transform_2, window_bounds = array<i64: 1, 128>}, {transform_indices = @transform_3, window_bounds = array<i64: 128, 128>}]} {
    %c0_i32 = arith.constant 0 : i32
    %0 = arith.cmpi eq, %arg2, %c0_i32 : i32
    %1 = arith.extui %0 : i1 to i32
    %c0_i32_0 = arith.constant 0 : i32
    %2 = arith.cmpi ne, %1, %c0_i32_0 : i32
    scf.if %2 {
      %cst_10 = arith.constant 0.000000e+00 : f32
      %12 = vector.broadcast %cst_10 : f32 to vector<128x128xf32>
      %c0_11 = arith.constant 0 : index
      %c0_12 = arith.constant 0 : index
      %13 = vector.load %arg7[%c0_11, %c0_12] : memref<128x128xf32, #tpu.memory_space<vmem>>, vector<128x128xf32>
      tpu.vector_store %arg7[%c0_11, %c0_12], %12 {strides = array<i32>} : memref<128x128xf32, #tpu.memory_space<vmem>>, vector<128x128xf32>,
    } else {
    }
    %c0 = arith.constant 0 : index
    %c0_1 = arith.constant 0 : index
    %3 = vector.load %arg7[%c0, %c0_1] : memref<128x128xf32, #tpu.memory_space<vmem>>, vector<128x128xf32>
    %c0_2 = arith.constant 0 : index
    %c0_3 = arith.constant 0 : index
    %4 = vector.load %arg3[%c0_2, %c0_3] : memref<128x256xbf16, #tpu.memory_space<vmem>>, vector<128x256xbf16>
    %c0_4 = arith.constant 0 : index
    %c0_5 = arith.constant 0 : index
    %5 = vector.load %arg4[%c0_4, %c0_5] : memref<256x128xbf16, #tpu.memory_space<vmem>>, vector<256x128xbf16>
    %cst = arith.constant dense<0.000000e+00> : vector<128x128xf32>
    %6 = tpu.matmul %4, %5, %cst {dimension_numbers = #tpu.dot_dimension_numbers<[1], [0], [0], [1], [0, 0, 1, 1], [], []>} : vector<128x256xbf16>, vector<256x128xbf16>, vector<128x128xf32> -> vector<128x128xf32>
    %7 = arith.addf %3, %6 : vector<128x128xf32>
    %c0_6 = arith.constant 0 : index
    %c0_7 = arith.constant 0 : index
    %8 = vector.load %arg7[%c0_6, %c0_7] : memref<128x128xf32, #tpu.memory_space<vmem>>, vector<128x128xf32>
    tpu.vector_store %arg7[%c0_6, %c0_7], %7 {strides = array<i32>} : memref<128x128xf32, #tpu.memory_space<vmem>>, vector<128x128xf32>,
    %c0_i32_8 = arith.constant 0 : i32
    %9 = arith.cmpi eq, %arg2, %c0_i32_8 : i32
    %10 = arith.extui %9 : i1 to i32
    %c0_i32_9 = arith.constant 0 : i32
    %11 = arith.cmpi ne, %10, %c0_i32_9 : i32
    scf.if %11 {
      %c0_10 = arith.constant 0 : index
      %c0_11 = arith.constant 0 : index
      %12 = vector.load %arg7[%c0_10, %c0_11] : memref<128x128xf32, #tpu.memory_space<vmem>>, vector<128x128xf32>
      %c0_12 = arith.constant 0 : index
      %c0_13 = arith.constant 0 : index
      %13 = vector.load %arg5[%c0_12, %c0_13] : memref<1x128xf32, #tpu.memory_space<vmem>>, vector<1x128xf32>
      %14 = vector.broadcast %13 : vector<1x128xf32> to vector<128x128xf32>
      %15 = arith.addf %12, %14 : vector<128x128xf32>
      %cst_14 = arith.constant 0.000000e+00 : f32
      %16 = vector.broadcast %cst_14 : f32 to vector<128x128xf32>
      %17 = arith.maximumf %15, %16 : vector<128x128xf32>
      %18 = arith.truncf %17 : vector<128x128xf32> to vector<128x128xbf16>
      %c0_15 = arith.constant 0 : index
      %c0_16 = arith.constant 0 : index
      %19 = vector.load %arg6[%c0_15, %c0_16] : memref<128x128xbf16, #tpu.memory_space<vmem>>, vector<128x128xbf16>
      tpu.vector_store %arg6[%c0_15, %c0_16], %18 {strides = array<i32>} : memref<128x128xbf16, #tpu.memory_space<vmem>>, vector<128x128xbf16>,
    } else {
    }
    return
  }
  func.func @transform_0(%arg0: i32, %arg1: i32, %arg2: i32) -> (i32, i32) {
    %c0_i32 = arith.constant 0 : i32
    return %arg0, %arg2 : i32, i32
  }
  func.func @transform_1(%arg0: i32, %arg1: i32, %arg2: i32) -> (i32, i32) {
    %c0_i32 = arith.constant 0 : i32
    return %arg2, %arg1 : i32, i32
  }
  func.func @transform_2(%arg0: i32, %arg1: i32, %arg2: i32) -> (i32, i32) {
    %c0_i32 = arith.constant 0 : i32
    %c0_i32_0 = arith.constant 0 : i32
    return %c0_i32, %arg1 : i32, i32
  }
  func.func @transform_3(%arg0: i32, %arg1: i32, %arg2: i32) -> (i32, i32) {
    %c0_i32 = arith.constant 0 : i32
    return %arg0, %arg1 : i32, i32
  }
}

module attributes {stable_mosaic.version = 11 : i64} {
  func.func @_matmul_kernel(%arg0: i32, %arg1: i32, %arg2: i32, %arg3: memref<128x128xbf16, #tpu.memory_space<vmem>>, %arg4: memref<128x128xbf16, #tpu.memory_space<vmem>>, %arg5: memref<1x128xf32, #tpu.memory_space<vmem>>, %arg6: memref<128x128xbf16, #tpu.memory_space<vmem>>, %arg7: memref<128x128xf32, #tpu.memory_space<vmem>>) attributes {dimension_semantics = [#tpu.dimension_semantics<parallel>, #tpu.dimension_semantics<parallel>, #tpu.dimension_semantics<arbitrary>], iteration_bounds = array<i64: 1, 1, 1>, scalar_prefetch = 0 : i64, scratch_operands = 1 : i64, tpu.core_type = #tpu.core_type<tc>, window_params = [{transform_indices = @transform_0, window_bounds = array<i64: 128, 128>}, {transform_indices = @transform_1, window_bounds = array<i64: 128, 128>}, {transform_indices = @transform_2, window_bounds = array<i64: 1, 128>}, {transform_indices = @transform_3, window_bounds = array<i64: 128, 128>}]} {
    %c0_i32 = arith.constant 0 : i32
    %0 = arith.cmpi eq, %arg2, %c0_i32 : i32
    %1 = arith.extui %0 : i1 to i32
    %c0_i32_0 = arith.constant 0 : i32
    %2 = arith.cmpi ne, %1, %c0_i32_0 : i32
    scf.if %2 {
      %cst_10 = arith.constant 0.000000e+00 : f32
      %12 = vector.broadcast %cst_10 : f32 to vector<128x128xf32>
      %c0_11 = arith.constant 0 : index
      %c0_12 = arith.constant 0 : index
      %13 = vector.load %arg7[%c0_11, %c0_12] : memref<128x128xf32, #tpu.memory_space<vmem>>, vector<128x128xf32>
      tpu.vector_store %arg7[%c0_11, %c0_12], %12 {strides = array<i32>} : memref<128x128xf32, #tpu.memory_space<vmem>>, vector<128x128xf32>,
    } else {
    }
    %c0 = arith.constant 0 : index
    %c0_1 = arith.constant 0 : index
    %3 = vector.load %arg7[%c0, %c0_1] : memref<128x128xf32, #tpu.memory_space<vmem>>, vector<128x128xf32>
    %c0_2 = arith.constant 0 : index
    %c0_3 = arith.constant 0 : index
    %4 = vector.load %arg3[%c0_2, %c0_3] : memref<128x128xbf16, #tpu.memory_space<vmem>>, vector<128x128xbf16>
    %c0_4 = arith.constant 0 : index
    %c0_5 = arith.constant 0 : index
    %5 = vector.load %arg4[%c0_4, %c0_5] : memref<128x128xbf16, #tpu.memory_space<vmem>>, vector<128x128xbf16>
    %cst = arith.constant dense<0.000000e+00> : vector<128x128xf32>
    %6 = tpu.matmul %4, %5, %cst {dimension_numbers = #tpu.dot_dimension_numbers<[1], [0], [0], [1], [0, 0, 1, 1], [], []>} : vector<128x128xbf16>, vector<128x128xbf16>, vector<128x128xf32> -> vector<128x128xf32>
    %7 = arith.addf %3, %6 : vector<128x128xf32>
    %c0_6 = arith.constant 0 : index
    %c0_7 = arith.constant 0 : index
    %8 = vector.load %arg7[%c0_6, %c0_7] : memref<128x128xf32, #tpu.memory_space<vmem>>, vector<128x128xf32>
    tpu.vector_store %arg7[%c0_6, %c0_7], %7 {strides = array<i32>} : memref<128x128xf32, #tpu.memory_space<vmem>>, vector<128x128xf32>,
    %c0_i32_8 = arith.constant 0 : i32
    %9 = arith.cmpi eq, %arg2, %c0_i32_8 : i32
    %10 = arith.extui %9 : i1 to i32
    %c0_i32_9 = arith.constant 0 : i32
    %11 = arith.cmpi ne, %10, %c0_i32_9 : i32
    scf.if %11 {
      %c0_10 = arith.constant 0 : index
      %c0_11 = arith.constant 0 : index
      %12 = vector.load %arg7[%c0_10, %c0_11] : memref<128x128xf32, #tpu.memory_space<vmem>>, vector<128x128xf32>
      %c0_12 = arith.constant 0 : index
      %c0_13 = arith.constant 0 : index
      %13 = vector.load %arg5[%c0_12, %c0_13] : memref<1x128xf32, #tpu.memory_space<vmem>>, vector<1x128xf32>
      %14 = vector.broadcast %13 : vector<1x128xf32> to vector<128x128xf32>
      %15 = arith.addf %12, %14 : vector<128x128xf32>
      %cst_14 = arith.constant 0.000000e+00 : f32
      %16 = vector.broadcast %cst_14 : f32 to vector<128x128xf32>
      %17 = arith.maximumf %15, %16 : vector<128x128xf32>
      %18 = arith.truncf %17 : vector<128x128xf32> to vector<128x128xbf16>
      %c0_15 = arith.constant 0 : index
      %c0_16 = arith.constant 0 : index
      %19 = vector.load %arg6[%c0_15, %c0_16] : memref<128x128xbf16, #tpu.memory_space<vmem>>, vector<128x128xbf16>
      tpu.vector_store %arg6[%c0_15, %c0_16], %18 {strides = array<i32>} : memref<128x128xbf16, #tpu.memory_space<vmem>>, vector<128x128xbf16>,
    } else {
    }
    return
  }
  func.func @transform_0(%arg0: i32, %arg1: i32, %arg2: i32) -> (i32, i32) {
    %c0_i32 = arith.constant 0 : i32
    return %arg0, %arg2 : i32, i32
  }
  func.func @transform_1(%arg0: i32, %arg1: i32, %arg2: i32) -> (i32, i32) {
    %c0_i32 = arith.constant 0 : i32
    return %arg2, %arg1 : i32, i32
  }
  func.func @transform_2(%arg0: i32, %arg1: i32, %arg2: i32) -> (i32, i32) {
    %c0_i32 = arith.constant 0 : i32
    %c0_i32_0 = arith.constant 0 : i32
    return %c0_i32, %arg1 : i32, i32
  }
  func.func @transform_3(%arg0: i32, %arg1: i32, %arg2: i32) -> (i32, i32) {
    %c0_i32 = arith.constant 0 : i32
    return %arg0, %arg1 : i32, i32
  }
}

module attributes {stable_mosaic.version = 11 : i64} {
  func.func @_matmul_kernel(%arg0: i32, %arg1: i32, %arg2: i32, %arg3: memref<128x256xbf16, #tpu.memory_space<vmem>>, %arg4: memref<256x128xbf16, #tpu.memory_space<vmem>>, %arg5: memref<1x128xf32, #tpu.memory_space<vmem>>, %arg6: memref<128x128xf32, #tpu.memory_space<vmem>>, %arg7: memref<128x128xf32, #tpu.memory_space<vmem>>) attributes {dimension_semantics = [#tpu.dimension_semantics<parallel>, #tpu.dimension_semantics<parallel>, #tpu.dimension_semantics<arbitrary>], iteration_bounds = array<i64: 1, 1, 1>, scalar_prefetch = 0 : i64, scratch_operands = 1 : i64, tpu.core_type = #tpu.core_type<tc>, window_params = [{transform_indices = @transform_0, window_bounds = array<i64: 128, 256>}, {transform_indices = @transform_1, window_bounds = array<i64: 256, 128>}, {transform_indices = @transform_2, window_bounds = array<i64: 1, 128>}, {transform_indices = @transform_3, window_bounds = array<i64: 128, 128>}]} {
    %c0_i32 = arith.constant 0 : i32
    %0 = arith.cmpi eq, %arg2, %c0_i32 : i32
    %1 = arith.extui %0 : i1 to i32
    %c0_i32_0 = arith.constant 0 : i32
    %2 = arith.cmpi ne, %1, %c0_i32_0 : i32
    scf.if %2 {
      %cst_10 = arith.constant 0.000000e+00 : f32
      %12 = vector.broadcast %cst_10 : f32 to vector<128x128xf32>
      %c0_11 = arith.constant 0 : index
      %c0_12 = arith.constant 0 : index
      %13 = vector.load %arg7[%c0_11, %c0_12] : memref<128x128xf32, #tpu.memory_space<vmem>>, vector<128x128xf32>
      tpu.vector_store %arg7[%c0_11, %c0_12], %12 {strides = array<i32>} : memref<128x128xf32, #tpu.memory_space<vmem>>, vector<128x128xf32>,
    } else {
    }
    %c0 = arith.constant 0 : index
    %c0_1 = arith.constant 0 : index
    %3 = vector.load %arg7[%c0, %c0_1] : memref<128x128xf32, #tpu.memory_space<vmem>>, vector<128x128xf32>
    %c0_2 = arith.constant 0 : index
    %c0_3 = arith.constant 0 : index
    %4 = vector.load %arg3[%c0_2, %c0_3] : memref<128x256xbf16, #tpu.memory_space<vmem>>, vector<128x256xbf16>
    %c0_4 = arith.constant 0 : index
    %c0_5 = arith.constant 0 : index
    %5 = vector.load %arg4[%c0_4, %c0_5] : memref<256x128xbf16, #tpu.memory_space<vmem>>, vector<256x128xbf16>
    %cst = arith.constant dense<0.000000e+00> : vector<128x128xf32>
    %6 = tpu.matmul %4, %5, %cst {dimension_numbers = #tpu.dot_dimension_numbers<[1], [0], [0], [1], [0, 0, 1, 1], [], []>} : vector<128x256xbf16>, vector<256x128xbf16>, vector<128x128xf32> -> vector<128x128xf32>
    %7 = arith.addf %3, %6 : vector<128x128xf32>
    %c0_6 = arith.constant 0 : index
    %c0_7 = arith.constant 0 : index
    %8 = vector.load %arg7[%c0_6, %c0_7] : memref<128x128xf32, #tpu.memory_space<vmem>>, vector<128x128xf32>
    tpu.vector_store %arg7[%c0_6, %c0_7], %7 {strides = array<i32>} : memref<128x128xf32, #tpu.memory_space<vmem>>, vector<128x128xf32>,
    %c0_i32_8 = arith.constant 0 : i32
    %9 = arith.cmpi eq, %arg2, %c0_i32_8 : i32
    %10 = arith.extui %9 : i1 to i32
    %c0_i32_9 = arith.constant 0 : i32
    %11 = arith.cmpi ne, %10, %c0_i32_9 : i32
    scf.if %11 {
      %c0_10 = arith.constant 0 : index
      %c0_11 = arith.constant 0 : index
      %12 = vector.load %arg7[%c0_10, %c0_11] : memref<128x128xf32, #tpu.memory_space<vmem>>, vector<128x128xf32>
      %c0_12 = arith.constant 0 : index
      %c0_13 = arith.constant 0 : index
      %13 = vector.load %arg5[%c0_12, %c0_13] : memref<1x128xf32, #tpu.memory_space<vmem>>, vector<1x128xf32>
      %14 = vector.broadcast %13 : vector<1x128xf32> to vector<128x128xf32>
      %15 = arith.addf %12, %14 : vector<128x128xf32>
      %c0_14 = arith.constant 0 : index
      %c0_15 = arith.constant 0 : index
      %16 = vector.load %arg6[%c0_14, %c0_15] : memref<128x128xf32, #tpu.memory_space<vmem>>, vector<128x128xf32>
      tpu.vector_store %arg6[%c0_14, %c0_15], %15 {strides = array<i32>} : memref<128x128xf32, #tpu.memory_space<vmem>>, vector<128x128xf32>,
    } else {
    }
    return
  }
  func.func @transform_0(%arg0: i32, %arg1: i32, %arg2: i32) -> (i32, i32) {
    %c0_i32 = arith.constant 0 : i32
    return %arg0, %arg2 : i32, i32
  }
  func.func @transform_1(%arg0: i32, %arg1: i32, %arg2: i32) -> (i32, i32) {
    %c0_i32 = arith.constant 0 : i32
    return %arg2, %arg1 : i32, i32
  }
  func.func @transform_2(%arg0: i32, %arg1: i32, %arg2: i32) -> (i32, i32) {
    %c0_i32 = arith.constant 0 : i32
    %c0_i32_0 = arith.constant 0 : i32
    return %c0_i32, %arg1 : i32, i32
  }
  func.func @transform_3(%arg0: i32, %arg1: i32, %arg2: i32) -> (i32, i32) {
    %c0_i32 = arith.constant 0 : i32
    return %arg0, %arg1 : i32, i32
  }
}

</mosaic_0001>

<bundles_post_ra>
// kernel: gwnn2_forward.7
= control target key start
LH: loop header
LB: loop body
LE: loop exit
PB: predicated region body
PF: predicated region fallthrough
CT: control target
= control target key end

     0   :  { %s549_s1 = inlined_call_operand.vmem [shape: bf16[128,128], index: 1, kind: input, shape index: {}]   ;;  %s550_s0 = inlined_call_operand.vmem [shape: bf16[128,128], index: 0, kind: input, shape index: {}]   ;;  %s551_s2 = inlined_call_operand.vmem [shape: bf16[128,128], index: 2, kind: output, shape index: {}]  }
   0x1   :  { %v390_v0 = vld [vmem:[%s549_s1 + $0x38] sm:$0xff]  ;;  %v389_v1 = vld [vmem:[%s549_s1 + $0x30] sm:$0xff]  ;;  %v388_v2 = vld [vmem:[%s549_s1 + $0x28] sm:$0xff] }
   0x2   :  { %175 = vmatpush.bf16.msra.mxu0 %v390_v0  ;;  %438 = vmatpush.bf16.msra.mxu1 %v390_v0  ;;  %v387_v3 = vld [vmem:[%s549_s1 + $0x20] sm:$0xff]  ;;  %v386_v4 = vld [vmem:[%s549_s1 + $0x18] sm:$0xff]  ;;  %v385_v5 = vld [vmem:[%s549_s1 + $0x10] sm:$0xff] }
   0x3   :  { %439 = vmatpush.bf16.msra.mxu2 %v390_v0  ;;  %440 = vmatpush.bf16.msra.mxu3 %v390_v0  ;;  %v384_v6 = vld [vmem:[%s549_s1 + $0x8] sm:$0xff]  ;;  %v383_v7 = vld [vmem:[%s549_s1] sm:$0xff]  ;;  %v377_v9 = vld [vmem:[%s550_s0 + $0x10] sm:$0xff] }
   0x4   :  { %v375_v8 = vld [vmem:[%s550_s0] sm:$0xff]  ;;  %v381_v11 = vld [vmem:[%s550_s0 + $0x30] sm:$0xff]  ;;  %v376_v12 = vld [vmem:[%s550_s0 + $0x8] sm:$0xff] }
   0x5   :  { %v379_v10 = vld [vmem:[%s550_s0 + $0x20] sm:$0xff]  ;;  %v378_v13 = vld [vmem:[%s550_s0 + $0x18] sm:$0xff]  ;;  %v380_v14 = vld [vmem:[%s550_s0 + $0x28] sm:$0xff] }
   0x6   :  { %176 = vmatpush.bf16.msra.mxu0 %v389_v1  ;;  %441 = vmatpush.bf16.msra.mxu1 %v389_v1  ;;  %v382_v15 = vld [vmem:[%s550_s0 + $0x38] sm:$0xff] }
   0x7   :  { %442 = vmatpush.bf16.msra.mxu2 %v389_v1  ;;  %443 = vmatpush.bf16.msra.mxu3 %v389_v1 }
   0xa   :  { %177 = vmatpush.bf16.msra.mxu0 %v388_v2  ;;  %444 = vmatpush.bf16.msra.mxu1 %v388_v2 }
   0xb   :  { %445 = vmatpush.bf16.msra.mxu2 %v388_v2  ;;  %446 = vmatpush.bf16.msra.mxu3 %v388_v2 }
   0xe   :  { %178 = vmatpush.bf16.msra.mxu0 %v387_v3  ;;  %447 = vmatpush.bf16.msra.mxu1 %v387_v3 }
   0xf   :  { %448 = vmatpush.bf16.msra.mxu2 %v387_v3  ;;  %449 = vmatpush.bf16.msra.mxu3 %v387_v3 }
  0x12   :  { %179 = vmatpush.bf16.msra.mxu0 %v386_v4  ;;  %450 = vmatpush.bf16.msra.mxu1 %v386_v4 }
  0x13   :  { %451 = vmatpush.bf16.msra.mxu2 %v386_v4  ;;  %452 = vmatpush.bf16.msra.mxu3 %v386_v4 }
  0x16   :  { %180 = vmatpush.bf16.msra.mxu0 %v385_v5  ;;  %453 = vmatpush.bf16.msra.mxu1 %v385_v5 }
  0x17   :  { %454 = vmatpush.bf16.msra.mxu2 %v385_v5  ;;  %455 = vmatpush.bf16.msra.mxu3 %v385_v5 }
  0x1a   :  { %181 = vmatpush.bf16.msra.mxu0 %v384_v6  ;;  %456 = vmatpush.bf16.msra.mxu1 %v384_v6 }
  0x1b   :  { %457 = vmatpush.bf16.msra.mxu2 %v384_v6  ;;  %458 = vmatpush.bf16.msra.mxu3 %v384_v6 }
  0x1e   :  { %182 = vmatpush.bf16.msra.mxu0 %v383_v7  ;;  %459 = vmatpush.bf16.msra.mxu1 %v383_v7 }
  0x1f   :  { %460 = vmatpush.bf16.msra.mxu2 %v383_v7  ;;  %461 = vmatpush.bf16.msra.mxu3 %v383_v7 }
  0x21   :  { %183 = vmatmul.bf16.vlgmr.msra.gmra.mxu0 %v375_v8  ;;  %193 = vmatmul.bf16.vlgmr.msra.gmra.mxu1 %v377_v9 }
  0x22   :  { %203 = vmatmul.bf16.vlgmr.msra.gmra.mxu2 %v379_v10  ;;  %213 = vmatmul.bf16.vlgmr.msra.gmra.mxu3 %v381_v11 }
  0x31   :  { %188 = vmatmul.bf16.gmra.mxu0 %v376_v12  ;;  %198 = vmatmul.bf16.gmra.mxu1 %v378_v13 }
  0x32   :  { %208 = vmatmul.bf16.gmra.mxu2 %v380_v14  ;;  %218 = vmatmul.bf16.gmra.mxu3 %v382_v15 }
  0x9e   :  { %v184_v16 = vpop.f32.mrf.mxu0  ;;  %v194_v17 = vpop.f32.mrf.mxu1 }
  0xa5   :  { %v204_v18 = vpop.f32.mrf.mxu2  ;;  %v214_v19 = vpop.f32.mrf.mxu3 }
  0xa6   :  { %v186_v20 = vpop.f32.mrf.mxu0  ;;  %v196_v21 = vpop.f32.mrf.mxu1 }
  0xa7   :  { %v394_v22 = vpack.c.bf16 %v186_v20, %v184_v16  ;;  %v404_v23 = vpack.c.bf16 %v196_v21, %v194_v17 }
  0xa9   :  { %395 = vst [vmem:[%s551_s2] sm:$0xff] %v394_v22  }
  0xaa   :  { %432 = vst [vmem:[%s551_s2 + $0x10] sm:$0xff] %v404_v23  }
  0xad   :  { %v206_v24 = vpop.f32.mrf.mxu2  ;;  %v216_v25 = vpop.f32.mrf.mxu3 }
  0xae   :  { %v414_v26 = vpack.c.bf16 %v206_v24, %v204_v18  ;;  %v424_v27 = vpack.c.bf16 %v216_v25, %v214_v19  ;;  %v189_v28 = vpop.f32.mrf.mxu0  ;;  %v199_v29 = vpop.f32.mrf.mxu1 }
  0xb0   :  { %434 = vst [vmem:[%s551_s2 + $0x20] sm:$0xff] %v414_v26  }
  0xb1   :  { %436 = vst [vmem:[%s551_s2 + $0x30] sm:$0xff] %v424_v27  }
  0xb5   :  { %v209_v30 = vpop.f32.mrf.mxu2  ;;  %v219_v31 = vpop.f32.mrf.mxu3 }
  0xb6   :  { %v191_v32 = vpop.f32.mrf.mxu0  ;;  %v201_v33 = vpop.f32.mrf.mxu1 }
  0xb7   :  { %v399_v34 = vpack.c.bf16 %v191_v32, %v189_v28  ;;  %v409_v35 = vpack.c.bf16 %v201_v33, %v199_v29 }
  0xb9   :  { %431 = vst [vmem:[%s551_s2 + $0x8] sm:$0xff] %v399_v34  }
  0xba   :  { %433 = vst [vmem:[%s551_s2 + $0x18] sm:$0xff] %v409_v35  }
  0xbd   :  { %v211_v36 = vpop.f32.mrf.mxu2  ;;  %v221_v37 = vpop.f32.mrf.mxu3 }
  0xbe   :  { %v419_v38 = vpack.c.bf16 %v211_v36, %v209_v30  ;;  %v429_v39 = vpack.c.bf16 %v221_v37, %v219_v31 }
  0xc0   :  { %435 = vst [vmem:[%s551_s2 + $0x28] sm:$0xff] %v419_v38  }
  0xc1   :  { %437 = vst [vmem:[%s551_s2 + $0x38] sm:$0xff] %v429_v39  }

// kernel: gwnn2_forward.8
= control target key start
LH: loop header
LB: loop body
LE: loop exit
PB: predicated region body
PF: predicated region fallthrough
CT: control target
= control target key end

     0   :  { %s982_s9 = smov 0   ;;  %s984_s10 = smov 0   ;;  %s1102_s0 = inlined_call_operand.vmem [shape: bf16[2,128,128], index: 0, kind: input, shape index: {}]   ;;  %s1103_s1 = inlined_call_operand.vmem [shape: bf16[128,128], index: 1, kind: input, shape index: {}]   ;;  %s1104_s2 = inlined_call_operand.vmem [shape: bf16[128,256], index: 2, kind: output, shape index: {}]  }
   0x1   :  { %s986_s11 = smov 0   ;;  %s988_s12 = smov 0  }
   0x2   :  { %s990_s13 = smov 0  }
   0x3 LB: > { %s722_s14 = sadd.s32 4294967295, %s965_s13   ;;  %s31_s15 = sadd.s32 1, %s961_s12  ;;  %s965_s13 = sphi %s990_s13, %s12_s13   ;;  %s961_s12 = sphi %s988_s12, %s1109_s12   ;;  %s957_s11 = sphi %s986_s11, %s1108_s11   ;;  %s953_s10 = sphi %s984_s10, %s1107_s10   ;;  %s949_s9 = sphi %s982_s9, %s1106_s9  }
   0x4   : > { %p33_p0 = scmp.ge.s32.totalorder %s31_s15, 2  ;;  %s96_s16 = sadd.s32 1, %s953_s10 }
   0x5   : > { %p106_p1 = scmp.ne.s32.totalorder %s953_s10, %s949_s9  ;;  %p107_p2 = scmp.eq.s32.totalorder %s722_s14, 1 }
   0x6   : > { %s1111_s15 = smov (%p33_p0, %s31_s15), 0  ;;  %p727_p4 = scmp.ge.s32.totalorder %s965_s13, 1 }
   0x7   : > { %p1014_p3 = por %p107_p2, %p106_p1  ;;  %s92_s18 = ssub.s32 %s961_s12, %s1111_s15 }
   0x8   : > { %p156_p5 = scmp.lt.s32.totalorder %s965_s13, 3  ;;  %p94_p6 = scmp.eq.s32.totalorder %s92_s18, 0 }
   0xa   : > { %p157_p7 = pnand %p727_p4, %p156_p5 }
   0xb   : > { %s1023_s19 = scalar_select %p94_p6, %s953_s10, %s96_s16  }
   0xc   : > { %160 = sbr.rel (%p157_p7) target bundleno = 222 (0xde), region = 28  ;;  %p190_p8 = scmp.lt.s32.totalorder (!%p157_p7), %s957_s11, 1 }
   0xd   : > { %s186_s21 = sand.u32 (!%p157_p7), 1, %s949_s9  }
   0xe   : > { %s728_s22 = sshll.u32 (!%p157_p7), %s186_s21, 6 }
   0xf   : > { %s1055_s23 = scalar_lea.vmem (!%p157_p7), [#allocation3], %s728_s22 }
  0x11   : > { %v815_v0 = vld [vmem:[%s1103_s1 + $0x38] sm:$0xff]  ;;  %v814_v1 = vld [vmem:[%s1103_s1 + $0x30] sm:$0xff]  ;;  %v813_v2 = vld [vmem:[%s1103_s1 + $0x28] sm:$0xff]  ;;  %s191_s4 = scalar_select %p190_p8, %s957_s11, 1 }
  0x12   : > { %373 = vmatpush.bf16.msra.mxu0 %v815_v0  ;;  %863 = vmatpush.bf16.msra.mxu1 %v815_v0  ;;  %v812_v3 = vld [vmem:[%s1103_s1 + $0x20] sm:$0xff]  ;;  %v811_v4 = vld [vmem:[%s1103_s1 + $0x18] sm:$0xff]  ;;  %v810_v5 = vld [vmem:[%s1103_s1 + $0x10] sm:$0xff]  ;;  %s796_s9 = sshll.u32 (%p1014_p3), %s957_s11, 2 }
  0x13   : > { %864 = vmatpush.bf16.msra.mxu2 %v815_v0  ;;  %865 = vmatpush.bf16.msra.mxu3 %v815_v0  ;;  %v809_v6 = vld [vmem:[%s1103_s1 + $0x8] sm:$0xff]  ;;  %s799_s7 = sshll.u32 %s191_s4, 6  ;;  %v808_v7 = vld [vmem:[%s1103_s1] sm:$0xff]  ;;  %s532_s26 = scalar_lea.vmem (%p1014_p3), %s1104_s2, %s796_s9 }
  0x14   : > { %s200_s20 = scalar_lea.vmem %s1102_s0, %s799_s7 }
  0x15   : > { %v800_v8 = vld [vmem:[%s200_s20] sm:$0xff]  ;;  %v802_v9 = vld [vmem:[%s200_s20 + $0x10] sm:$0xff]  ;;  %v801_v12 = vld [vmem:[%s200_s20 + $0x8] sm:$0xff] }
  0x16   : > { %374 = vmatpush.bf16.msra.mxu0 %v814_v1  ;;  %866 = vmatpush.bf16.msra.mxu1 %v814_v1  ;;  %v804_v10 = vld [vmem:[%s200_s20 + $0x20] sm:$0xff]  ;;  %v806_v11 = vld [vmem:[%s200_s20 + $0x30] sm:$0xff]  ;;  %v803_v13 = vld [vmem:[%s200_s20 + $0x18] sm:$0xff] }
  0x17   : > { %867 = vmatpush.bf16.msra.mxu2 %v814_v1  ;;  %868 = vmatpush.bf16.msra.mxu3 %v814_v1  ;;  %v805_v14 = vld [vmem:[%s200_s20 + $0x28] sm:$0xff]  ;;  %v807_v15 = vld [vmem:[%s200_s20 + $0x38] sm:$0xff] }
  0x1a   : > { %375 = vmatpush.bf16.msra.mxu0 %v813_v2  ;;  %869 = vmatpush.bf16.msra.mxu1 %v813_v2 }
  0x1b   : > { %870 = vmatpush.bf16.msra.mxu2 %v813_v2  ;;  %871 = vmatpush.bf16.msra.mxu3 %v813_v2 }
  0x1e   : > { %376 = vmatpush.bf16.msra.mxu0 %v812_v3  ;;  %872 = vmatpush.bf16.msra.mxu1 %v812_v3 }
  0x1f   : > { %873 = vmatpush.bf16.msra.mxu2 %v812_v3  ;;  %874 = vmatpush.bf16.msra.mxu3 %v812_v3 }
  0x22   : > { %377 = vmatpush.bf16.msra.mxu0 %v811_v4  ;;  %875 = vmatpush.bf16.msra.mxu1 %v811_v4 }
  0x23   : > { %876 = vmatpush.bf16.msra.mxu2 %v811_v4  ;;  %877 = vmatpush.bf16.msra.mxu3 %v811_v4 }
  0x26   : > { %378 = vmatpush.bf16.msra.mxu0 %v810_v5  ;;  %878 = vmatpush.bf16.msra.mxu1 %v810_v5 }
  0x27   : > { %879 = vmatpush.bf16.msra.mxu2 %v810_v5  ;;  %880 = vmatpush.bf16.msra.mxu3 %v810_v5 }
  0x2a   : > { %379 = vmatpush.bf16.msra.mxu0 %v809_v6  ;;  %881 = vmatpush.bf16.msra.mxu1 %v809_v6 }
  0x2b   : > { %882 = vmatpush.bf16.msra.mxu2 %v809_v6  ;;  %883 = vmatpush.bf16.msra.mxu3 %v809_v6 }
  0x2e   : > { %380 = vmatpush.bf16.msra.mxu0 %v808_v7  ;;  %884 = vmatpush.bf16.msra.mxu1 %v808_v7 }
  0x2f   : > { %885 = vmatpush.bf16.msra.mxu2 %v808_v7  ;;  %886 = vmatpush.bf16.msra.mxu3 %v808_v7 }
  0x31   : > { %381 = vmatmul.bf16.vlgmr.msra.gmra.mxu0 %v800_v8  ;;  %391 = vmatmul.bf16.vlgmr.msra.gmra.mxu1 %v802_v9 }
  0x32   : > { %401 = vmatmul.bf16.vlgmr.msra.gmra.mxu2 %v804_v10  ;;  %411 = vmatmul.bf16.vlgmr.msra.gmra.mxu3 %v806_v11 }
  0x41   : > { %386 = vmatmul.bf16.gmra.mxu0 %v801_v12  ;;  %396 = vmatmul.bf16.gmra.mxu1 %v803_v13 }
  0x42   : > { %406 = vmatmul.bf16.gmra.mxu2 %v805_v14  ;;  %416 = vmatmul.bf16.gmra.mxu3 %v807_v15 }
  0xae   : > { %v382_v16 = vpop.f32.mrf.mxu0  ;;  %v392_v17 = vpop.f32.mrf.mxu1 }
  0xaf   : > { %v473_v22 = vmax.f32 %v382_v16, 0.0  ;;  %v477_v23 = vmax.f32 %v392_v17, 0.0 }
  0xb5   : > { %v402_v18 = vpop.f32.mrf.mxu2  ;;  %v412_v19 = vpop.f32.mrf.mxu3 }
  0xb6   : > { %v384_v20 = vpop.f32.mrf.mxu0  ;;  %v394_v21 = vpop.f32.mrf.mxu1  ;;  %v481_v30 = vmax.f32 %v402_v18, 0.0  ;;  %v485_v31 = vmax.f32 %v412_v19, 0.0 }
  0xb7   : > { %v474_v24 = vmax.f32 %v384_v20, 0.0  ;;  %v478_v25 = vmax.f32 %v394_v21, 0.0 }
  0xb9   : > { %v819_v26 = vpack.c.bf16 %v474_v24, %v473_v22  ;;  %v829_v27 = vpack.c.bf16 %v478_v25, %v477_v23 }
  0xbb   : > { %820 = vst [vmem:[%s1055_s23] sm:$0xff] %v819_v26  }
  0xbc   : > { %857 = vst [vmem:[%s1055_s23 + $0x10] sm:$0xff] %v829_v27  }
  0xbd   : > { %v404_v28 = vpop.f32.mrf.mxu2  ;;  %v414_v29 = vpop.f32.mrf.mxu3 }
  0xbe   : > { %v482_v32 = vmax.f32 %v404_v28, 0.0  ;;  %v486_v33 = vmax.f32 %v414_v29, 0.0  ;;  %v387_v34 = vpop.f32.mrf.mxu0  ;;  %v397_v35 = vpop.f32.mrf.mxu1 }
  0xbf   : > { %v475_v42 = vmax.f32 %v387_v34, 0.0  ;;  %v479_v43 = vmax.f32 %v397_v35, 0.0 }
  0xc0   : > { %v839_v36 = vpack.c.bf16 %v482_v32, %v481_v30  ;;  %v849_v37 = vpack.c.bf16 %v486_v33, %v485_v31 }
  0xc2   : > { %859 = vst [vmem:[%s1055_s23 + $0x20] sm:$0xff] %v839_v36   ;;  %v549_v56 = vld [vmem:[%s1055_s23] sm:$0xf] (%p1014_p3)  ;;  %v551_v57 = vld [vmem:[%s1055_s23 + $0x4] sm:$0xf] (%p1014_p3) }
  0xc3   : > { %861 = vst [vmem:[%s1055_s23 + $0x30] sm:$0xff] %v849_v37   ;;  %v557_v60 = vld [vmem:[%s1055_s23 + $0x10] sm:$0xf] (%p1014_p3)  ;;  %v559_v61 = vld [vmem:[%s1055_s23 + $0x14] sm:$0xf] (%p1014_p3) }
  0xc4   : > { %550 = vst [vmem:[%s532_s26] sm:$0xf] (%p1014_p3), %v549_v56 }
  0xc5   : > { %v407_v38 = vpop.f32.mrf.mxu2  ;;  %v417_v39 = vpop.f32.mrf.mxu3  ;;  %552 = vst [vmem:[%s532_s26 + $0x8] sm:$0xf] (%p1014_p3), %v551_v57 }
  0xc6   : > { %v389_v40 = vpop.f32.mrf.mxu0  ;;  %v399_v41 = vpop.f32.mrf.mxu1  ;;  %v483_v50 = vmax.f32 %v407_v38, 0.0  ;;  %v487_v51 = vmax.f32 %v417_v39, 0.0  ;;  %558 = vst [vmem:[%s532_s26 + $0x20] sm:$0xf] (%p1014_p3), %v557_v60 }
  0xc7   : > { %v476_v44 = vmax.f32 %v389_v40, 0.0  ;;  %v480_v45 = vmax.f32 %v399_v41, 0.0  ;;  %560 = vst [vmem:[%s532_s26 + $0x28] sm:$0xf] (%p1014_p3), %v559_v61 }
  0xc9   : > { %v824_v46 = vpack.c.bf16 %v476_v44, %v475_v42  ;;  %v834_v47 = vpack.c.bf16 %v480_v45, %v479_v43  ;;  %v565_v0 = vld [vmem:[%s1055_s23 + $0x20] sm:$0xf] (%p1014_p3)  ;;  %v567_v1 = vld [vmem:[%s1055_s23 + $0x24] sm:$0xf] (%p1014_p3) }
  0xca   : > { %566 = vst [vmem:[%s532_s26 + $0x40] sm:$0xf] (%p1014_p3), %v565_v0  ;;  %v573_v4 = vld [vmem:[%s1055_s23 + $0x30] sm:$0xf] (%p1014_p3)  ;;  %v575_v5 = vld [vmem:[%s1055_s23 + $0x34] sm:$0xf] (%p1014_p3) }
  0xcb   : > { %856 = vst [vmem:[%s1055_s23 + $0x8] sm:$0xff] %v824_v46  }
  0xcc   : > { %858 = vst [vmem:[%s1055_s23 + $0x18] sm:$0xff] %v834_v47  }
  0xcd   : > { %v409_v48 = vpop.f32.mrf.mxu2  ;;  %v419_v49 = vpop.f32.mrf.mxu3  ;;  %568 = vst [vmem:[%s532_s26 + $0x48] sm:$0xf] (%p1014_p3), %v567_v1 }
  0xce   : > { %v484_v52 = vmax.f32 %v409_v48, 0.0  ;;  %v488_v53 = vmax.f32 %v419_v49, 0.0  ;;  %574 = vst [vmem:[%s532_s26 + $0x60] sm:$0xf] (%p1014_p3), %v573_v4 }
  0xcf   : > { %527 = sbr.rel (!%p1014_p3) target bundleno = 222 (0xde), region = 40  ;;  %576 = vst [vmem:[%s532_s26 + $0x68] sm:$0xf] (%p1014_p3), %v575_v5 }
  0xd0   : > { %v844_v54 = vpack.c.bf16 %v484_v52, %v483_v50  ;;  %v854_v55 = vpack.c.bf16 %v488_v53, %v487_v51 }
  0xd2   : > { %860 = vst [vmem:[%s1055_s23 + $0x28] sm:$0xff] %v844_v54   ;;  %v553_v58 = vld [vmem:[%s1055_s23 + $0x8] sm:$0xf] (%p1014_p3)  ;;  %v555_v59 = vld [vmem:[%s1055_s23 + $0xc] sm:$0xf] (%p1014_p3) }
  0xd3   : > { %862 = vst [vmem:[%s1055_s23 + $0x38] sm:$0xff] %v854_v55   ;;  %v561_v62 = vld [vmem:[%s1055_s23 + $0x18] sm:$0xf] (%p1014_p3)  ;;  %v563_v63 = vld [vmem:[%s1055_s23 + $0x1c] sm:$0xf] (%p1014_p3) }
  0xd4   : > { %554 = vst [vmem:[%s532_s26 + $0x10] sm:$0xf] %v553_v58 }
  0xd5   : > { %556 = vst [vmem:[%s532_s26 + $0x18] sm:$0xf] %v555_v59 }
  0xd6   : > { %562 = vst [vmem:[%s532_s26 + $0x30] sm:$0xf] %v561_v62 }
  0xd7   : > { %564 = vst [vmem:[%s532_s26 + $0x38] sm:$0xf] %v563_v63 }
  0xd9   : > { %v569_v2 = vld [vmem:[%s1055_s23 + $0x28] sm:$0xf]  ;;  %v571_v3 = vld [vmem:[%s1055_s23 + $0x2c] sm:$0xf] }
  0xda   : > { %570 = vst [vmem:[%s532_s26 + $0x50] sm:$0xf] %v569_v2  ;;  %v577_v6 = vld [vmem:[%s1055_s23 + $0x38] sm:$0xf]  ;;  %v579_v7 = vld [vmem:[%s1055_s23 + $0x3c] sm:$0xf] }
  0xdb   : > { %572 = vst [vmem:[%s532_s26 + $0x58] sm:$0xf] %v571_v3 }
  0xdc   : > { %578 = vst [vmem:[%s532_s26 + $0x70] sm:$0xf] %v577_v6 }
  0xdd   : > { %580 = vst [vmem:[%s532_s26 + $0x78] sm:$0xf] %v579_v7 }
  0xde PF: > { %s12_s13 = sadd.s32 1, %s965_s13   ;;  %s1106_s9 = smov %s953_s10 }
  0xdf   : > { %p9_p9 = scmp.ge.s32.totalorder %s12_s13, 4   ;;  %s1107_s10 = smov %s1023_s19 }
  0xe0   : > { %s1108_s11 = smov %s961_s12  ;;  %s1109_s12 = smov %s1111_s15 }
  0xe1   :  { %11 = sbr.rel (!%p9_p9) target bundleno = 3 (0x3), region = 110 }

// kernel: gwnn2_forward.9
= control target key start
LH: loop header
LB: loop body
LE: loop exit
PB: predicated region body
PF: predicated region fallthrough
CT: control target
= control target key end

     0   :  { %s928_s1 = inlined_call_operand.vmem [shape: bf16[256,128], index: 1, kind: input, shape index: {}]   ;;  %s929_s0 = inlined_call_operand.vmem [shape: bf16[128,256], index: 0, kind: input, shape index: {}]   ;;  %s930_s2 = inlined_call_operand.vmem [shape: f32[1,128], index: 2, kind: input, shape index: {}]   ;;  %s931_s3 = inlined_call_operand.vmem [shape: bf16[128,128], index: 3, kind: output, shape index: {}]  }
   0x1   :  { %v646_v0 = vld [vmem:[%s928_s1 + $0x38] sm:$0xff]  ;;  %v645_v2 = vld [vmem:[%s928_s1 + $0x30] sm:$0xff]  ;;  %v644_v4 = vld [vmem:[%s928_s1 + $0x28] sm:$0xff] }
   0x2   :  { %v654_v1 = vld [vmem:[%s928_s1 + $0x78] sm:$0xff]  ;;  %274 = vmatpush.bf16.msra.mxu0 %v646_v0  ;;  %702 = vmatpush.bf16.msra.mxu2 %v646_v0  ;;  %v653_v3 = vld [vmem:[%s928_s1 + $0x70] sm:$0xff]  ;;  %v652_v5 = vld [vmem:[%s928_s1 + $0x68] sm:$0xff] }
   0x3   :  { %323 = vmatpush.bf16.msra.mxu1 %v654_v1  ;;  %710 = vmatpush.bf16.msra.mxu3 %v654_v1  ;;  %v643_v6 = vld [vmem:[%s928_s1 + $0x20] sm:$0xff]  ;;  %v642_v8 = vld [vmem:[%s928_s1 + $0x18] sm:$0xff]  ;;  %v641_v10 = vld [vmem:[%s928_s1 + $0x10] sm:$0xff] }
   0x4   :  { %v651_v7 = vld [vmem:[%s928_s1 + $0x60] sm:$0xff]  ;;  %v650_v9 = vld [vmem:[%s928_s1 + $0x58] sm:$0xff]  ;;  %v649_v11 = vld [vmem:[%s928_s1 + $0x50] sm:$0xff] }
   0x5   :  { %v640_v12 = vld [vmem:[%s928_s1 + $0x8] sm:$0xff]  ;;  %v639_v14 = vld [vmem:[%s928_s1] sm:$0xff]  ;;  %v505_v28 = vld [vmem:[%s929_s0 + $0x10] sm:$0xf] }
   0x6   :  { %275 = vmatpush.bf16.msra.mxu0 %v645_v2  ;;  %703 = vmatpush.bf16.msra.mxu2 %v645_v2  ;;  %v648_v13 = vld [vmem:[%s928_s1 + $0x48] sm:$0xff]  ;;  %v647_v15 = vld [vmem:[%s928_s1 + $0x40] sm:$0xff]  ;;  %v626_v29 = vld [vmem:[%s929_s0 + $0x14] sm:$0xf0] }
   0x7   :  { %324 = vmatpush.bf16.msra.mxu1 %v653_v3  ;;  %711 = vmatpush.bf16.msra.mxu3 %v653_v3  ;;  %v497_v16 = vld [vmem:[%s929_s0] sm:$0xf]  ;;  %v624_v17 = vld [vmem:[%s929_s0 + $0x4] sm:$0xf0]  ;;  %v623_v20 = vld [vmem:[%s929_s0 + $0x4] sm:$0xf]  ;;  %v506_v36 = vor.u32 %v626_v29, %v505_v28 }
   0x8   :  { %v529_v18 = vld [vmem:[%s929_s0 + $0x40] sm:$0xf]  ;;  %v632_v19 = vld [vmem:[%s929_s0 + $0x44] sm:$0xf0]  ;;  %v499_v21 = vld [vmem:[%s929_s0 + $0x8] sm:$0xf0]  ;;  %v498_v24 = vor.u32 %v624_v17, %v497_v16 }
   0x9   :  { %v631_v22 = vld [vmem:[%s929_s0 + $0x44] sm:$0xf]  ;;  %v531_v23 = vld [vmem:[%s929_s0 + $0x48] sm:$0xf0]  ;;  %v530_v25 = vor.u32 %v632_v19, %v529_v18  ;;  %v502_v26 = vor.u32 %v623_v20, %v499_v21  ;;  %v537_v30 = vld [vmem:[%s929_s0 + $0x50] sm:$0xf] }
   0xa   :  { %276 = vmatpush.bf16.msra.mxu0 %v644_v4  ;;  %704 = vmatpush.bf16.msra.mxu2 %v644_v4  ;;  %v534_v27 = vor.u32 %v631_v22, %v531_v23  ;;  %v634_v31 = vld [vmem:[%s929_s0 + $0x54] sm:$0xf0]  ;;  %v625_v32 = vld [vmem:[%s929_s0 + $0x14] sm:$0xf]  ;;  %v507_v33 = vld [vmem:[%s929_s0 + $0x18] sm:$0xf0] }
   0xb   :  { %325 = vmatpush.bf16.msra.mxu1 %v652_v5  ;;  %712 = vmatpush.bf16.msra.mxu3 %v652_v5  ;;  %v633_v34 = vld [vmem:[%s929_s0 + $0x54] sm:$0xf]  ;;  %v539_v35 = vld [vmem:[%s929_s0 + $0x58] sm:$0xf0]  ;;  %v538_v37 = vor.u32 %v634_v31, %v537_v30  ;;  %v510_v38 = vor.u32 %v625_v32, %v507_v33  ;;  %v513_v40 = vld [vmem:[%s929_s0 + $0x20] sm:$0xf] }
   0xc   :  { %v542_v39 = vor.u32 %v633_v34, %v539_v35  ;;  %v628_v41 = vld [vmem:[%s929_s0 + $0x24] sm:$0xf0]  ;;  %v545_v42 = vld [vmem:[%s929_s0 + $0x60] sm:$0xf]  ;;  %v627_v44 = vld [vmem:[%s929_s0 + $0x24] sm:$0xf] }
   0xd   :  { %v636_v43 = vld [vmem:[%s929_s0 + $0x64] sm:$0xf0]  ;;  %v515_v45 = vld [vmem:[%s929_s0 + $0x28] sm:$0xf0]  ;;  %v635_v46 = vld [vmem:[%s929_s0 + $0x64] sm:$0xf]  ;;  %v514_v48 = vor.u32 %v628_v41, %v513_v40 }
   0xe   :  { %277 = vmatpush.bf16.msra.mxu0 %v643_v6  ;;  %705 = vmatpush.bf16.msra.mxu2 %v643_v6  ;;  %v547_v47 = vld [vmem:[%s929_s0 + $0x68] sm:$0xf0]  ;;  %v546_v49 = vor.u32 %v636_v43, %v545_v42  ;;  %v518_v50 = vor.u32 %v627_v44, %v515_v45  ;;  %v521_v52 = vld [vmem:[%s929_s0 + $0x30] sm:$0xf]  ;;  %v630_v53 = vld [vmem:[%s929_s0 + $0x34] sm:$0xf0] }
   0xf   :  { %326 = vmatpush.bf16.msra.mxu1 %v651_v7  ;;  %713 = vmatpush.bf16.msra.mxu3 %v651_v7  ;;  %v550_v51 = vor.u32 %v635_v46, %v547_v47  ;;  %v553_v54 = vld [vmem:[%s929_s0 + $0x70] sm:$0xf]  ;;  %v638_v55 = vld [vmem:[%s929_s0 + $0x74] sm:$0xf0]  ;;  %v629_v56 = vld [vmem:[%s929_s0 + $0x34] sm:$0xf]  ;;  %v522_v60 = vor.u32 %v630_v53, %v521_v52 }
  0x10   :  { %v523_v57 = vld [vmem:[%s929_s0 + $0x38] sm:$0xf0]  ;;  %v637_v58 = vld [vmem:[%s929_s0 + $0x74] sm:$0xf]  ;;  %v554_v61 = vor.u32 %v638_v55, %v553_v54  ;;  %v886_v3 = vld [vmem:[%s930_s2] ss:$0 sm:$0xff] }
  0x11   :  { %v555_v59 = vld [vmem:[%s929_s0 + $0x78] sm:$0xf0]  ;;  %v526_v62 = vor.u32 %v629_v56, %v523_v57 }
  0x12   :  { %278 = vmatpush.bf16.msra.mxu0 %v642_v8  ;;  %706 = vmatpush.bf16.msra.mxu2 %v642_v8  ;;  %v558_v63 = vor.u32 %v637_v58, %v555_v59 }
  0x13   :  { %327 = vmatpush.bf16.msra.mxu1 %v650_v9  ;;  %714 = vmatpush.bf16.msra.mxu3 %v650_v9 }
  0x16   :  { %279 = vmatpush.bf16.msra.mxu0 %v641_v10  ;;  %707 = vmatpush.bf16.msra.mxu2 %v641_v10 }
  0x17   :  { %328 = vmatpush.bf16.msra.mxu1 %v649_v11  ;;  %715 = vmatpush.bf16.msra.mxu3 %v649_v11 }
  0x1a   :  { %280 = vmatpush.bf16.msra.mxu0 %v640_v12  ;;  %708 = vmatpush.bf16.msra.mxu2 %v640_v12 }
  0x1b   :  { %329 = vmatpush.bf16.msra.mxu1 %v648_v13  ;;  %716 = vmatpush.bf16.msra.mxu3 %v648_v13 }
  0x1e   :  { %281 = vmatpush.bf16.msra.mxu0 %v639_v14  ;;  %709 = vmatpush.bf16.msra.mxu2 %v639_v14 }
  0x1f   :  { %330 = vmatpush.bf16.msra.mxu1 %v647_v15  ;;  %717 = vmatpush.bf16.msra.mxu3 %v647_v15 }
  0x21   :  { %282 = vmatmul.bf16.vlgmr.msra.gmra.mxu0 %v498_v24  ;;  %302 = vmatmul.bf16.vlgmr.msra.gmra.mxu2 %v530_v25 }
  0x22   :  { %331 = vmatmul.bf16.vlgmr.msra.gmra.mxu1 %v502_v26  ;;  %351 = vmatmul.bf16.vlgmr.msra.gmra.mxu3 %v534_v27 }
  0x31   :  { %287 = vmatmul.bf16.gmra.mxu0 %v506_v36  ;;  %307 = vmatmul.bf16.gmra.mxu2 %v538_v37 }
  0x32   :  { %336 = vmatmul.bf16.gmra.mxu1 %v510_v38  ;;  %356 = vmatmul.bf16.gmra.mxu3 %v542_v39 }
  0x41   :  { %292 = vmatmul.bf16.gmra.mxu0 %v514_v48  ;;  %312 = vmatmul.bf16.gmra.mxu2 %v546_v49 }
  0x42   :  { %341 = vmatmul.bf16.gmra.mxu1 %v518_v50  ;;  %361 = vmatmul.bf16.gmra.mxu3 %v550_v51 }
  0x51   :  { %297 = vmatmul.bf16.gmra.mxu0 %v522_v60  ;;  %317 = vmatmul.bf16.gmra.mxu2 %v554_v61 }
  0x52   :  { %346 = vmatmul.bf16.gmra.mxu1 %v526_v62  ;;  %366 = vmatmul.bf16.gmra.mxu3 %v558_v63 }
  0x9e   :  { %v283_v0 = vpop.f32.mrf.mxu0 }
  0x9f   :  { %v332_v1 = vpop.f32.mrf.mxu1 }
  0xa0   :  { %v333_v2 = vadd.f32 %v332_v1, %v283_v0 }
  0xa2   :  { %v427_v8 = vadd.f32 %v886_v3, %v333_v2 }
  0xa4   :  { %v303_v4 = vpop.f32.mrf.mxu2  ;;  %v443_v12 = vmax.f32 %v427_v8, 0.0 }
  0xa5   :  { %v352_v5 = vpop.f32.mrf.mxu3 }
  0xa6   :  { %v285_v6 = vpop.f32.mrf.mxu0  ;;  %v353_v10 = vadd.f32 %v352_v5, %v303_v4 }
  0xa7   :  { %v334_v7 = vpop.f32.mrf.mxu1 }
  0xa8   :  { %v335_v9 = vadd.f32 %v334_v7, %v285_v6  ;;  %v435_v16 = vadd.f32 %v886_v3, %v353_v10 }
  0xaa   :  { %v428_v11 = vadd.f32 %v886_v3, %v335_v9  ;;  %v451_v22 = vmax.f32 %v435_v16, 0.0 }
  0xac   :  { %v444_v13 = vmax.f32 %v428_v11, 0.0  ;;  %v305_v14 = vpop.f32.mrf.mxu2 }
  0xad   :  { %v354_v15 = vpop.f32.mrf.mxu3 }
  0xae   :  { %v658_v17 = vpack.c.bf16 %v444_v13, %v443_v12  ;;  %v355_v18 = vadd.f32 %v354_v15, %v305_v14  ;;  %v288_v19 = vpop.f32.mrf.mxu0 }
  0xaf   :  { %v337_v20 = vpop.f32.mrf.mxu1 }
  0xb0   :  { %659 = vst [vmem:[%s931_s3] sm:$0xff] %v658_v17   ;;  %v436_v21 = vadd.f32 %v886_v3, %v355_v18  ;;  %v338_v25 = vadd.f32 %v337_v20, %v288_v19 }
  0xb2   :  { %v452_v23 = vmax.f32 %v436_v21, 0.0  ;;  %v429_v30 = vadd.f32 %v886_v3, %v338_v25 }
  0xb4   :  { %v678_v24 = vpack.c.bf16 %v452_v23, %v451_v22  ;;  %v308_v26 = vpop.f32.mrf.mxu2  ;;  %v445_v34 = vmax.f32 %v429_v30, 0.0 }
  0xb5   :  { %v357_v27 = vpop.f32.mrf.mxu3 }
  0xb6   :  { %698 = vst [vmem:[%s931_s3 + $0x20] sm:$0xff] %v678_v24   ;;  %v290_v28 = vpop.f32.mrf.mxu0  ;;  %v358_v32 = vadd.f32 %v357_v27, %v308_v26 }
  0xb7   :  { %v339_v29 = vpop.f32.mrf.mxu1 }
  0xb8   :  { %v340_v31 = vadd.f32 %v339_v29, %v290_v28  ;;  %v437_v38 = vadd.f32 %v886_v3, %v358_v32 }
  0xba   :  { %v430_v33 = vadd.f32 %v886_v3, %v340_v31  ;;  %v453_v44 = vmax.f32 %v437_v38, 0.0 }
  0xbc   :  { %v446_v35 = vmax.f32 %v430_v33, 0.0  ;;  %v310_v36 = vpop.f32.mrf.mxu2 }
  0xbd   :  { %v359_v37 = vpop.f32.mrf.mxu3 }
  0xbe   :  { %v663_v39 = vpack.c.bf16 %v446_v35, %v445_v34  ;;  %v360_v40 = vadd.f32 %v359_v37, %v310_v36  ;;  %v293_v41 = vpop.f32.mrf.mxu0 }
  0xbf   :  { %v342_v42 = vpop.f32.mrf.mxu1 }
  0xc0   :  { %695 = vst [vmem:[%s931_s3 + $0x8] sm:$0xff] %v663_v39   ;;  %v438_v43 = vadd.f32 %v886_v3, %v360_v40  ;;  %v343_v47 = vadd.f32 %v342_v42, %v293_v41 }
  0xc2   :  { %v454_v45 = vmax.f32 %v438_v43, 0.0  ;;  %v431_v52 = vadd.f32 %v886_v3, %v343_v47 }
  0xc4   :  { %v683_v46 = vpack.c.bf16 %v454_v45, %v453_v44  ;;  %v313_v48 = vpop.f32.mrf.mxu2  ;;  %v447_v56 = vmax.f32 %v431_v52, 0.0 }
  0xc5   :  { %v362_v49 = vpop.f32.mrf.mxu3 }
  0xc6   :  { %699 = vst [vmem:[%s931_s3 + $0x28] sm:$0xff] %v683_v46   ;;  %v295_v50 = vpop.f32.mrf.mxu0  ;;  %v363_v54 = vadd.f32 %v362_v49, %v313_v48 }
  0xc7   :  { %v344_v51 = vpop.f32.mrf.mxu1 }
  0xc8   :  { %v345_v53 = vadd.f32 %v344_v51, %v295_v50  ;;  %v439_v60 = vadd.f32 %v886_v3, %v363_v54 }
  0xca   :  { %v432_v55 = vadd.f32 %v886_v3, %v345_v53  ;;  %v455_v2 = vmax.f32 %v439_v60, 0.0 }
  0xcc   :  { %v448_v57 = vmax.f32 %v432_v55, 0.0  ;;  %v315_v58 = vpop.f32.mrf.mxu2 }
  0xcd   :  { %v364_v59 = vpop.f32.mrf.mxu3 }
  0xce   :  { %v668_v61 = vpack.c.bf16 %v448_v57, %v447_v56  ;;  %v365_v62 = vadd.f32 %v364_v59, %v315_v58  ;;  %v298_v63 = vpop.f32.mrf.mxu0 }
  0xcf   :  { %v347_v0 = vpop.f32.mrf.mxu1 }
  0xd0   :  { %696 = vst [vmem:[%s931_s3 + $0x10] sm:$0xff] %v668_v61   ;;  %v440_v1 = vadd.f32 %v886_v3, %v365_v62  ;;  %v348_v6 = vadd.f32 %v347_v0, %v298_v63 }
  0xd2   :  { %v456_v4 = vmax.f32 %v440_v1, 0.0  ;;  %v433_v11 = vadd.f32 %v886_v3, %v348_v6 }
  0xd4   :  { %v688_v5 = vpack.c.bf16 %v456_v4, %v455_v2  ;;  %v318_v7 = vpop.f32.mrf.mxu2  ;;  %v449_v15 = vmax.f32 %v433_v11, 0.0 }
  0xd5   :  { %v367_v8 = vpop.f32.mrf.mxu3 }
  0xd6   :  { %700 = vst [vmem:[%s931_s3 + $0x30] sm:$0xff] %v688_v5   ;;  %v300_v9 = vpop.f32.mrf.mxu0  ;;  %v368_v13 = vadd.f32 %v367_v8, %v318_v7 }
  0xd7   :  { %v349_v10 = vpop.f32.mrf.mxu1 }
  0xd8   :  { %v350_v12 = vadd.f32 %v349_v10, %v300_v9  ;;  %v441_v19 = vadd.f32 %v886_v3, %v368_v13 }
  0xda   :  { %v434_v14 = vadd.f32 %v886_v3, %v350_v12  ;;  %v457_v23 = vmax.f32 %v441_v19, 0.0 }
  0xdc   :  { %v450_v16 = vmax.f32 %v434_v14, 0.0  ;;  %v320_v17 = vpop.f32.mrf.mxu2 }
  0xdd   :  { %v369_v18 = vpop.f32.mrf.mxu3 }
  0xde   :  { %v673_v20 = vpack.c.bf16 %v450_v16, %v449_v15  ;;  %v370_v21 = vadd.f32 %v369_v18, %v320_v17 }
  0xe0   :  { %697 = vst [vmem:[%s931_s3 + $0x18] sm:$0xff] %v673_v20   ;;  %v442_v22 = vadd.f32 %v886_v3, %v370_v21 }
  0xe2   :  { %v458_v24 = vmax.f32 %v442_v22, 0.0 }
  0xe4   :  { %v693_v25 = vpack.c.bf16 %v458_v24, %v457_v23 }
  0xe6   :  { %701 = vst [vmem:[%s931_s3 + $0x38] sm:$0xff] %v693_v25  }

// kernel: gwnn2_forward.10
= control target key start
LH: loop header
LB: loop body
LE: loop exit
PB: predicated region body
PF: predicated region fallthrough
CT: control target
= control target key end

     0   :  { %s597_s1 = inlined_call_operand.vmem [shape: bf16[128,128], index: 1, kind: input, shape index: {}]   ;;  %s598_s2 = inlined_call_operand.vmem [shape: f32[1,128], index: 2, kind: input, shape index: {}]   ;;  %s599_s0 = inlined_call_operand.vmem [shape: bf16[128,128], index: 0, kind: input, shape index: {}]   ;;  %s600_s3 = inlined_call_operand.vmem [shape: bf16[128,128], index: 3, kind: output, shape index: {}]  }
   0x1   :  { %v429_v0 = vld [vmem:[%s597_s1 + $0x38] sm:$0xff]  ;;  %v428_v1 = vld [vmem:[%s597_s1 + $0x30] sm:$0xff]  ;;  %v427_v2 = vld [vmem:[%s597_s1 + $0x28] sm:$0xff] }
   0x2   :  { %178 = vmatpush.bf16.msra.mxu0 %v429_v0  ;;  %477 = vmatpush.bf16.msra.mxu1 %v429_v0  ;;  %v426_v3 = vld [vmem:[%s597_s1 + $0x20] sm:$0xff]  ;;  %v425_v4 = vld [vmem:[%s597_s1 + $0x18] sm:$0xff]  ;;  %v424_v5 = vld [vmem:[%s597_s1 + $0x10] sm:$0xff] }
   0x3   :  { %478 = vmatpush.bf16.msra.mxu2 %v429_v0  ;;  %479 = vmatpush.bf16.msra.mxu3 %v429_v0  ;;  %v423_v6 = vld [vmem:[%s597_s1 + $0x8] sm:$0xff]  ;;  %v422_v7 = vld [vmem:[%s597_s1] sm:$0xff]  ;;  %v416_v9 = vld [vmem:[%s599_s0 + $0x10] sm:$0xff] }
   0x4   :  { %v414_v8 = vld [vmem:[%s599_s0] sm:$0xff]  ;;  %v420_v11 = vld [vmem:[%s599_s0 + $0x30] sm:$0xff]  ;;  %v415_v12 = vld [vmem:[%s599_s0 + $0x8] sm:$0xff] }
   0x5   :  { %v418_v10 = vld [vmem:[%s599_s0 + $0x20] sm:$0xff]  ;;  %v417_v13 = vld [vmem:[%s599_s0 + $0x18] sm:$0xff]  ;;  %v419_v14 = vld [vmem:[%s599_s0 + $0x28] sm:$0xff] }
   0x6   :  { %179 = vmatpush.bf16.msra.mxu0 %v428_v1  ;;  %480 = vmatpush.bf16.msra.mxu1 %v428_v1  ;;  %v421_v15 = vld [vmem:[%s599_s0 + $0x38] sm:$0xff]  ;;  %v501_v18 = vld [vmem:[%s598_s2] ss:$0 sm:$0xff] }
   0x7   :  { %481 = vmatpush.bf16.msra.mxu2 %v428_v1  ;;  %482 = vmatpush.bf16.msra.mxu3 %v428_v1 }
   0xa   :  { %180 = vmatpush.bf16.msra.mxu0 %v427_v2  ;;  %483 = vmatpush.bf16.msra.mxu1 %v427_v2 }
   0xb   :  { %484 = vmatpush.bf16.msra.mxu2 %v427_v2  ;;  %485 = vmatpush.bf16.msra.mxu3 %v427_v2 }
   0xe   :  { %181 = vmatpush.bf16.msra.mxu0 %v426_v3  ;;  %486 = vmatpush.bf16.msra.mxu1 %v426_v3 }
   0xf   :  { %487 = vmatpush.bf16.msra.mxu2 %v426_v3  ;;  %488 = vmatpush.bf16.msra.mxu3 %v426_v3 }
  0x12   :  { %182 = vmatpush.bf16.msra.mxu0 %v425_v4  ;;  %489 = vmatpush.bf16.msra.mxu1 %v425_v4 }
  0x13   :  { %490 = vmatpush.bf16.msra.mxu2 %v425_v4  ;;  %491 = vmatpush.bf16.msra.mxu3 %v425_v4 }
  0x16   :  { %183 = vmatpush.bf16.msra.mxu0 %v424_v5  ;;  %492 = vmatpush.bf16.msra.mxu1 %v424_v5 }
  0x17   :  { %493 = vmatpush.bf16.msra.mxu2 %v424_v5  ;;  %494 = vmatpush.bf16.msra.mxu3 %v424_v5 }
  0x1a   :  { %184 = vmatpush.bf16.msra.mxu0 %v423_v6  ;;  %495 = vmatpush.bf16.msra.mxu1 %v423_v6 }
  0x1b   :  { %496 = vmatpush.bf16.msra.mxu2 %v423_v6  ;;  %497 = vmatpush.bf16.msra.mxu3 %v423_v6 }
  0x1e   :  { %185 = vmatpush.bf16.msra.mxu0 %v422_v7  ;;  %498 = vmatpush.bf16.msra.mxu1 %v422_v7 }
  0x1f   :  { %499 = vmatpush.bf16.msra.mxu2 %v422_v7  ;;  %500 = vmatpush.bf16.msra.mxu3 %v422_v7 }
  0x21   :  { %186 = vmatmul.bf16.vlgmr.msra.gmra.mxu0 %v414_v8  ;;  %196 = vmatmul.bf16.vlgmr.msra.gmra.mxu1 %v416_v9 }
  0x22   :  { %206 = vmatmul.bf16.vlgmr.msra.gmra.mxu2 %v418_v10  ;;  %216 = vmatmul.bf16.vlgmr.msra.gmra.mxu3 %v420_v11 }
  0x31   :  { %191 = vmatmul.bf16.gmra.mxu0 %v415_v12  ;;  %201 = vmatmul.bf16.gmra.mxu1 %v417_v13 }
  0x32   :  { %211 = vmatmul.bf16.gmra.mxu2 %v419_v14  ;;  %221 = vmatmul.bf16.gmra.mxu3 %v421_v15 }
  0x9e   :  { %v187_v16 = vpop.f32.mrf.mxu0  ;;  %v197_v17 = vpop.f32.mrf.mxu1 }
  0x9f   :  { %v282_v19 = vadd.f32 %v501_v18, %v187_v16  ;;  %v286_v20 = vadd.f32 %v501_v18, %v197_v17 }
  0xa1   :  { %v298_v27 = vmax.f32 %v282_v19, 0.0  ;;  %v302_v28 = vmax.f32 %v286_v20, 0.0 }
  0xa5   :  { %v207_v21 = vpop.f32.mrf.mxu2  ;;  %v217_v22 = vpop.f32.mrf.mxu3 }
  0xa6   :  { %v189_v23 = vpop.f32.mrf.mxu0  ;;  %v199_v24 = vpop.f32.mrf.mxu1  ;;  %v290_v33 = vadd.f32 %v501_v18, %v207_v21  ;;  %v294_v34 = vadd.f32 %v501_v18, %v217_v22 }
  0xa7   :  { %v283_v25 = vadd.f32 %v501_v18, %v189_v23  ;;  %v287_v26 = vadd.f32 %v501_v18, %v199_v24 }
  0xa8   :  { %v306_v41 = vmax.f32 %v290_v33, 0.0  ;;  %v310_v42 = vmax.f32 %v294_v34, 0.0 }
  0xa9   :  { %v299_v29 = vmax.f32 %v283_v25, 0.0  ;;  %v303_v30 = vmax.f32 %v287_v26, 0.0 }
  0xab   :  { %v433_v31 = vpack.c.bf16 %v299_v29, %v298_v27  ;;  %v443_v32 = vpack.c.bf16 %v303_v30, %v302_v28 }
  0xad   :  { %434 = vst [vmem:[%s600_s3] sm:$0xff] %v433_v31   ;;  %v209_v35 = vpop.f32.mrf.mxu2  ;;  %v219_v36 = vpop.f32.mrf.mxu3 }
  0xae   :  { %471 = vst [vmem:[%s600_s3 + $0x10] sm:$0xff] %v443_v32   ;;  %v291_v37 = vadd.f32 %v501_v18, %v209_v35  ;;  %v295_v38 = vadd.f32 %v501_v18, %v219_v36  ;;  %v192_v39 = vpop.f32.mrf.mxu0  ;;  %v202_v40 = vpop.f32.mrf.mxu1 }
  0xaf   :  { %v284_v47 = vadd.f32 %v501_v18, %v192_v39  ;;  %v288_v48 = vadd.f32 %v501_v18, %v202_v40 }
  0xb0   :  { %v307_v43 = vmax.f32 %v291_v37, 0.0  ;;  %v311_v44 = vmax.f32 %v295_v38, 0.0 }
  0xb1   :  { %v300_v55 = vmax.f32 %v284_v47, 0.0  ;;  %v304_v56 = vmax.f32 %v288_v48, 0.0 }
  0xb2   :  { %v453_v45 = vpack.c.bf16 %v307_v43, %v306_v41  ;;  %v463_v46 = vpack.c.bf16 %v311_v44, %v310_v42 }
  0xb4   :  { %473 = vst [vmem:[%s600_s3 + $0x20] sm:$0xff] %v453_v45  }
  0xb5   :  { %475 = vst [vmem:[%s600_s3 + $0x30] sm:$0xff] %v463_v46   ;;  %v212_v49 = vpop.f32.mrf.mxu2  ;;  %v222_v50 = vpop.f32.mrf.mxu3 }
  0xb6   :  { %v194_v51 = vpop.f32.mrf.mxu0  ;;  %v204_v52 = vpop.f32.mrf.mxu1  ;;  %v292_v61 = vadd.f32 %v501_v18, %v212_v49  ;;  %v296_v62 = vadd.f32 %v501_v18, %v222_v50 }
  0xb7   :  { %v285_v53 = vadd.f32 %v501_v18, %v194_v51  ;;  %v289_v54 = vadd.f32 %v501_v18, %v204_v52 }
  0xb8   :  { %v308_v3 = vmax.f32 %v292_v61, 0.0  ;;  %v312_v4 = vmax.f32 %v296_v62, 0.0 }
  0xb9   :  { %v301_v57 = vmax.f32 %v285_v53, 0.0  ;;  %v305_v58 = vmax.f32 %v289_v54, 0.0 }
  0xbb   :  { %v438_v59 = vpack.c.bf16 %v301_v57, %v300_v55  ;;  %v448_v60 = vpack.c.bf16 %v305_v58, %v304_v56 }
  0xbd   :  { %470 = vst [vmem:[%s600_s3 + $0x8] sm:$0xff] %v438_v59   ;;  %v214_v63 = vpop.f32.mrf.mxu2  ;;  %v224_v0 = vpop.f32.mrf.mxu3 }
  0xbe   :  { %472 = vst [vmem:[%s600_s3 + $0x18] sm:$0xff] %v448_v60   ;;  %v293_v1 = vadd.f32 %v501_v18, %v214_v63  ;;  %v297_v2 = vadd.f32 %v501_v18, %v224_v0 }
  0xc0   :  { %v309_v5 = vmax.f32 %v293_v1, 0.0  ;;  %v313_v6 = vmax.f32 %v297_v2, 0.0 }
  0xc2   :  { %v458_v7 = vpack.c.bf16 %v309_v5, %v308_v3  ;;  %v468_v8 = vpack.c.bf16 %v313_v6, %v312_v4 }
  0xc4   :  { %474 = vst [vmem:[%s600_s3 + $0x28] sm:$0xff] %v458_v7  }
  0xc5   :  { %476 = vst [vmem:[%s600_s3 + $0x38] sm:$0xff] %v468_v8  }

// kernel: gwnn2_forward.13
= control target key start
LH: loop header
LB: loop body
LE: loop exit
PB: predicated region body
PF: predicated region fallthrough
CT: control target
= control target key end

     0   :  { %s873_s1 = inlined_call_operand.vmem [shape: bf16[256,128], index: 1, kind: input, shape index: {}]   ;;  %s874_s0 = inlined_call_operand.vmem [shape: bf16[128,256], index: 0, kind: input, shape index: {}]   ;;  %s875_s2 = inlined_call_operand.vmem [shape: f32[1,128], index: 2, kind: input, shape index: {}]   ;;  %s876_s3 = inlined_call_operand.vmem [shape: f32[128,128], index: 3, kind: output, shape index: {}]  }
   0x1   :  { %v614_v0 = vld [vmem:[%s873_s1 + $0x38] sm:$0xff]  ;;  %v613_v2 = vld [vmem:[%s873_s1 + $0x30] sm:$0xff]  ;;  %v612_v4 = vld [vmem:[%s873_s1 + $0x28] sm:$0xff] }
   0x2   :  { %v622_v1 = vld [vmem:[%s873_s1 + $0x78] sm:$0xff]  ;;  %274 = vmatpush.bf16.msra.mxu0 %v614_v0  ;;  %623 = vmatpush.bf16.msra.mxu2 %v614_v0  ;;  %v621_v3 = vld [vmem:[%s873_s1 + $0x70] sm:$0xff]  ;;  %v620_v5 = vld [vmem:[%s873_s1 + $0x68] sm:$0xff] }
   0x3   :  { %323 = vmatpush.bf16.msra.mxu1 %v622_v1  ;;  %631 = vmatpush.bf16.msra.mxu3 %v622_v1  ;;  %v611_v6 = vld [vmem:[%s873_s1 + $0x20] sm:$0xff]  ;;  %v610_v8 = vld [vmem:[%s873_s1 + $0x18] sm:$0xff]  ;;  %v609_v10 = vld [vmem:[%s873_s1 + $0x10] sm:$0xff] }
   0x4   :  { %v619_v7 = vld [vmem:[%s873_s1 + $0x60] sm:$0xff]  ;;  %v618_v9 = vld [vmem:[%s873_s1 + $0x58] sm:$0xff]  ;;  %v617_v11 = vld [vmem:[%s873_s1 + $0x50] sm:$0xff] }
   0x5   :  { %v608_v12 = vld [vmem:[%s873_s1 + $0x8] sm:$0xff]  ;;  %v607_v14 = vld [vmem:[%s873_s1] sm:$0xff]  ;;  %v473_v28 = vld [vmem:[%s874_s0 + $0x10] sm:$0xf] }
   0x6   :  { %275 = vmatpush.bf16.msra.mxu0 %v613_v2  ;;  %624 = vmatpush.bf16.msra.mxu2 %v613_v2  ;;  %v616_v13 = vld [vmem:[%s873_s1 + $0x48] sm:$0xff]  ;;  %v615_v15 = vld [vmem:[%s873_s1 + $0x40] sm:$0xff]  ;;  %v594_v29 = vld [vmem:[%s874_s0 + $0x14] sm:$0xf0] }
   0x7   :  { %324 = vmatpush.bf16.msra.mxu1 %v621_v3  ;;  %632 = vmatpush.bf16.msra.mxu3 %v621_v3  ;;  %v465_v16 = vld [vmem:[%s874_s0] sm:$0xf]  ;;  %v592_v17 = vld [vmem:[%s874_s0 + $0x4] sm:$0xf0]  ;;  %v591_v20 = vld [vmem:[%s874_s0 + $0x4] sm:$0xf]  ;;  %v474_v36 = vor.u32 %v594_v29, %v473_v28 }
   0x8   :  { %v497_v18 = vld [vmem:[%s874_s0 + $0x40] sm:$0xf]  ;;  %v600_v19 = vld [vmem:[%s874_s0 + $0x44] sm:$0xf0]  ;;  %v467_v21 = vld [vmem:[%s874_s0 + $0x8] sm:$0xf0]  ;;  %v466_v24 = vor.u32 %v592_v17, %v465_v16 }
   0x9   :  { %v599_v22 = vld [vmem:[%s874_s0 + $0x44] sm:$0xf]  ;;  %v499_v23 = vld [vmem:[%s874_s0 + $0x48] sm:$0xf0]  ;;  %v498_v25 = vor.u32 %v600_v19, %v497_v18  ;;  %v470_v26 = vor.u32 %v591_v20, %v467_v21  ;;  %v505_v30 = vld [vmem:[%s874_s0 + $0x50] sm:$0xf] }
   0xa   :  { %276 = vmatpush.bf16.msra.mxu0 %v612_v4  ;;  %625 = vmatpush.bf16.msra.mxu2 %v612_v4  ;;  %v502_v27 = vor.u32 %v599_v22, %v499_v23  ;;  %v602_v31 = vld [vmem:[%s874_s0 + $0x54] sm:$0xf0]  ;;  %v593_v32 = vld [vmem:[%s874_s0 + $0x14] sm:$0xf]  ;;  %v475_v33 = vld [vmem:[%s874_s0 + $0x18] sm:$0xf0] }
   0xb   :  { %325 = vmatpush.bf16.msra.mxu1 %v620_v5  ;;  %633 = vmatpush.bf16.msra.mxu3 %v620_v5  ;;  %v601_v34 = vld [vmem:[%s874_s0 + $0x54] sm:$0xf]  ;;  %v507_v35 = vld [vmem:[%s874_s0 + $0x58] sm:$0xf0]  ;;  %v506_v37 = vor.u32 %v602_v31, %v505_v30  ;;  %v478_v38 = vor.u32 %v593_v32, %v475_v33  ;;  %v481_v40 = vld [vmem:[%s874_s0 + $0x20] sm:$0xf] }
   0xc   :  { %v510_v39 = vor.u32 %v601_v34, %v507_v35  ;;  %v596_v41 = vld [vmem:[%s874_s0 + $0x24] sm:$0xf0]  ;;  %v513_v42 = vld [vmem:[%s874_s0 + $0x60] sm:$0xf]  ;;  %v595_v44 = vld [vmem:[%s874_s0 + $0x24] sm:$0xf] }
   0xd   :  { %v604_v43 = vld [vmem:[%s874_s0 + $0x64] sm:$0xf0]  ;;  %v483_v45 = vld [vmem:[%s874_s0 + $0x28] sm:$0xf0]  ;;  %v603_v46 = vld [vmem:[%s874_s0 + $0x64] sm:$0xf]  ;;  %v482_v48 = vor.u32 %v596_v41, %v481_v40 }
   0xe   :  { %277 = vmatpush.bf16.msra.mxu0 %v611_v6  ;;  %626 = vmatpush.bf16.msra.mxu2 %v611_v6  ;;  %v515_v47 = vld [vmem:[%s874_s0 + $0x68] sm:$0xf0]  ;;  %v514_v49 = vor.u32 %v604_v43, %v513_v42  ;;  %v486_v50 = vor.u32 %v595_v44, %v483_v45  ;;  %v489_v52 = vld [vmem:[%s874_s0 + $0x30] sm:$0xf]  ;;  %v598_v53 = vld [vmem:[%s874_s0 + $0x34] sm:$0xf0] }
   0xf   :  { %326 = vmatpush.bf16.msra.mxu1 %v619_v7  ;;  %634 = vmatpush.bf16.msra.mxu3 %v619_v7  ;;  %v518_v51 = vor.u32 %v603_v46, %v515_v47  ;;  %v521_v54 = vld [vmem:[%s874_s0 + $0x70] sm:$0xf]  ;;  %v606_v55 = vld [vmem:[%s874_s0 + $0x74] sm:$0xf0]  ;;  %v597_v56 = vld [vmem:[%s874_s0 + $0x34] sm:$0xf]  ;;  %v490_v60 = vor.u32 %v598_v53, %v489_v52 }
  0x10   :  { %v491_v57 = vld [vmem:[%s874_s0 + $0x38] sm:$0xf0]  ;;  %v605_v58 = vld [vmem:[%s874_s0 + $0x74] sm:$0xf]  ;;  %v522_v61 = vor.u32 %v606_v55, %v521_v54  ;;  %v807_v1 = vld [vmem:[%s875_s2] ss:$0 sm:$0xff] }
  0x11   :  { %v523_v59 = vld [vmem:[%s874_s0 + $0x78] sm:$0xf0]  ;;  %v494_v62 = vor.u32 %v597_v56, %v491_v57 }
  0x12   :  { %278 = vmatpush.bf16.msra.mxu0 %v610_v8  ;;  %627 = vmatpush.bf16.msra.mxu2 %v610_v8  ;;  %v526_v63 = vor.u32 %v605_v58, %v523_v59 }
  0x13   :  { %327 = vmatpush.bf16.msra.mxu1 %v618_v9  ;;  %635 = vmatpush.bf16.msra.mxu3 %v618_v9 }
  0x16   :  { %279 = vmatpush.bf16.msra.mxu0 %v609_v10  ;;  %628 = vmatpush.bf16.msra.mxu2 %v609_v10 }
  0x17   :  { %328 = vmatpush.bf16.msra.mxu1 %v617_v11  ;;  %636 = vmatpush.bf16.msra.mxu3 %v617_v11 }
  0x1a   :  { %280 = vmatpush.bf16.msra.mxu0 %v608_v12  ;;  %629 = vmatpush.bf16.msra.mxu2 %v608_v12 }
  0x1b   :  { %329 = vmatpush.bf16.msra.mxu1 %v616_v13  ;;  %637 = vmatpush.bf16.msra.mxu3 %v616_v13 }
  0x1e   :  { %281 = vmatpush.bf16.msra.mxu0 %v607_v14  ;;  %630 = vmatpush.bf16.msra.mxu2 %v607_v14 }
  0x1f   :  { %330 = vmatpush.bf16.msra.mxu1 %v615_v15  ;;  %638 = vmatpush.bf16.msra.mxu3 %v615_v15 }
  0x21   :  { %282 = vmatmul.bf16.vlgmr.msra.gmra.mxu0 %v466_v24  ;;  %302 = vmatmul.bf16.vlgmr.msra.gmra.mxu2 %v498_v25 }
  0x22   :  { %331 = vmatmul.bf16.vlgmr.msra.gmra.mxu1 %v470_v26  ;;  %351 = vmatmul.bf16.vlgmr.msra.gmra.mxu3 %v502_v27 }
  0x31   :  { %287 = vmatmul.bf16.gmra.mxu0 %v474_v36  ;;  %307 = vmatmul.bf16.gmra.mxu2 %v506_v37 }
  0x32   :  { %336 = vmatmul.bf16.gmra.mxu1 %v478_v38  ;;  %356 = vmatmul.bf16.gmra.mxu3 %v510_v39 }
  0x41   :  { %292 = vmatmul.bf16.gmra.mxu0 %v482_v48  ;;  %312 = vmatmul.bf16.gmra.mxu2 %v514_v49 }
  0x42   :  { %341 = vmatmul.bf16.gmra.mxu1 %v486_v50  ;;  %361 = vmatmul.bf16.gmra.mxu3 %v518_v51 }
  0x51   :  { %297 = vmatmul.bf16.gmra.mxu0 %v490_v60  ;;  %317 = vmatmul.bf16.gmra.mxu2 %v522_v61 }
  0x52   :  { %346 = vmatmul.bf16.gmra.mxu1 %v494_v62  ;;  %366 = vmatmul.bf16.gmra.mxu3 %v526_v63 }
  0x9e   :  { %v283_v0 = vpop.f32.mrf.mxu0 }
  0x9f   :  { %v332_v2 = vpop.f32.mrf.mxu1 }
  0xa0   :  { %v333_v3 = vadd.f32 %v332_v2, %v283_v0 }
  0xa2   :  { %v427_v4 = vadd.f32 %v807_v1, %v333_v3 }
  0xa4   :  { %443 = vst [vmem:[%s876_s3] sm:$0xff] %v427_v4  ;;  %v303_v5 = vpop.f32.mrf.mxu2 }
  0xa5   :  { %v352_v6 = vpop.f32.mrf.mxu3 }
  0xa6   :  { %v353_v7 = vadd.f32 %v352_v6, %v303_v5  ;;  %v285_v8 = vpop.f32.mrf.mxu0 }
  0xa7   :  { %v334_v9 = vpop.f32.mrf.mxu1 }
  0xa8   :  { %v435_v10 = vadd.f32 %v807_v1, %v353_v7  ;;  %v335_v11 = vadd.f32 %v334_v9, %v285_v8 }
  0xaa   :  { %451 = vst [vmem:[%s876_s3 + $0x40] sm:$0xff] %v435_v10  ;;  %v428_v12 = vadd.f32 %v807_v1, %v335_v11 }
  0xac   :  { %444 = vst [vmem:[%s876_s3 + $0x8] sm:$0xff] %v428_v12  ;;  %v305_v13 = vpop.f32.mrf.mxu2 }
  0xad   :  { %v354_v14 = vpop.f32.mrf.mxu3 }
  0xae   :  { %v355_v15 = vadd.f32 %v354_v14, %v305_v13  ;;  %v288_v16 = vpop.f32.mrf.mxu0 }
  0xaf   :  { %v337_v17 = vpop.f32.mrf.mxu1 }
  0xb0   :  { %v436_v18 = vadd.f32 %v807_v1, %v355_v15  ;;  %v338_v19 = vadd.f32 %v337_v17, %v288_v16 }
  0xb2   :  { %452 = vst [vmem:[%s876_s3 + $0x48] sm:$0xff] %v436_v18  ;;  %v429_v20 = vadd.f32 %v807_v1, %v338_v19 }
  0xb4   :  { %445 = vst [vmem:[%s876_s3 + $0x10] sm:$0xff] %v429_v20  ;;  %v308_v21 = vpop.f32.mrf.mxu2 }
  0xb5   :  { %v357_v22 = vpop.f32.mrf.mxu3 }
  0xb6   :  { %v358_v23 = vadd.f32 %v357_v22, %v308_v21  ;;  %v290_v24 = vpop.f32.mrf.mxu0 }
  0xb7   :  { %v339_v25 = vpop.f32.mrf.mxu1 }
  0xb8   :  { %v437_v26 = vadd.f32 %v807_v1, %v358_v23  ;;  %v340_v27 = vadd.f32 %v339_v25, %v290_v24 }
  0xba   :  { %453 = vst [vmem:[%s876_s3 + $0x50] sm:$0xff] %v437_v26  ;;  %v430_v28 = vadd.f32 %v807_v1, %v340_v27 }
  0xbc   :  { %446 = vst [vmem:[%s876_s3 + $0x18] sm:$0xff] %v430_v28  ;;  %v310_v29 = vpop.f32.mrf.mxu2 }
  0xbd   :  { %v359_v30 = vpop.f32.mrf.mxu3 }
  0xbe   :  { %v360_v31 = vadd.f32 %v359_v30, %v310_v29  ;;  %v293_v32 = vpop.f32.mrf.mxu0 }
  0xbf   :  { %v342_v33 = vpop.f32.mrf.mxu1 }
  0xc0   :  { %v438_v34 = vadd.f32 %v807_v1, %v360_v31  ;;  %v343_v35 = vadd.f32 %v342_v33, %v293_v32 }
  0xc2   :  { %454 = vst [vmem:[%s876_s3 + $0x58] sm:$0xff] %v438_v34  ;;  %v431_v36 = vadd.f32 %v807_v1, %v343_v35 }
  0xc4   :  { %447 = vst [vmem:[%s876_s3 + $0x20] sm:$0xff] %v431_v36  ;;  %v313_v37 = vpop.f32.mrf.mxu2 }
  0xc5   :  { %v362_v38 = vpop.f32.mrf.mxu3 }
  0xc6   :  { %v363_v39 = vadd.f32 %v362_v38, %v313_v37  ;;  %v295_v40 = vpop.f32.mrf.mxu0 }
  0xc7   :  { %v344_v41 = vpop.f32.mrf.mxu1 }
  0xc8   :  { %v439_v42 = vadd.f32 %v807_v1, %v363_v39  ;;  %v345_v43 = vadd.f32 %v344_v41, %v295_v40 }
  0xca   :  { %455 = vst [vmem:[%s876_s3 + $0x60] sm:$0xff] %v439_v42  ;;  %v432_v44 = vadd.f32 %v807_v1, %v345_v43 }
  0xcc   :  { %448 = vst [vmem:[%s876_s3 + $0x28] sm:$0xff] %v432_v44  ;;  %v315_v45 = vpop.f32.mrf.mxu2 }
  0xcd   :  { %v364_v46 = vpop.f32.mrf.mxu3 }
  0xce   :  { %v365_v47 = vadd.f32 %v364_v46, %v315_v45  ;;  %v298_v48 = vpop.f32.mrf.mxu0 }
  0xcf   :  { %v347_v49 = vpop.f32.mrf.mxu1 }
  0xd0   :  { %v440_v50 = vadd.f32 %v807_v1, %v365_v47  ;;  %v348_v51 = vadd.f32 %v347_v49, %v298_v48 }
  0xd2   :  { %456 = vst [vmem:[%s876_s3 + $0x68] sm:$0xff] %v440_v50  ;;  %v433_v52 = vadd.f32 %v807_v1, %v348_v51 }
  0xd4   :  { %449 = vst [vmem:[%s876_s3 + $0x30] sm:$0xff] %v433_v52  ;;  %v318_v53 = vpop.f32.mrf.mxu2 }
  0xd5   :  { %v367_v54 = vpop.f32.mrf.mxu3 }
  0xd6   :  { %v368_v55 = vadd.f32 %v367_v54, %v318_v53  ;;  %v300_v56 = vpop.f32.mrf.mxu0 }
  0xd7   :  { %v349_v57 = vpop.f32.mrf.mxu1 }
  0xd8   :  { %v441_v58 = vadd.f32 %v807_v1, %v368_v55  ;;  %v350_v59 = vadd.f32 %v349_v57, %v300_v56 }
  0xda   :  { %457 = vst [vmem:[%s876_s3 + $0x70] sm:$0xff] %v441_v58  ;;  %v434_v60 = vadd.f32 %v807_v1, %v350_v59 }
  0xdc   :  { %450 = vst [vmem:[%s876_s3 + $0x38] sm:$0xff] %v434_v60  ;;  %v320_v61 = vpop.f32.mrf.mxu2 }
  0xdd   :  { %v369_v62 = vpop.f32.mrf.mxu3 }
  0xde   :  { %v370_v63 = vadd.f32 %v369_v62, %v320_v61 }
  0xe0   :  { %v442_v0 = vadd.f32 %v807_v1, %v370_v63 }
  0xe2   :  { %458 = vst [vmem:[%s876_s3 + $0x78] sm:$0xff] %v442_v0 }

</bundles_post_ra>
